<compile_context>
chip_gen: v7x
topology: tpu7x:2x2x1
jax: 0.10.0
libtpu: 0.0.40
codegen_flags: <defaults>
</compile_context>

<pallas_src>
import jax
import jax.numpy as jnp
from jax import lax
from jax.experimental import pallas as pl
from jax.experimental.pallas import tpu as pltpu

# ---- model hyper-parameters (from DocCnnClassifierCreateInfo) ----
EMBEDDING_SIZE = 100      # conv in_channels
NUM_FILTERS = 100         # conv out_channels
HIDDEN_SIZE = 128         # linear1 out
NUM_CLASSES = 2           # linear2 out
KSIZES = (3, 5, 7)        # conv kernel sizes (padding 1, 2, 3 -> "same")
MAX_PAD = 3               # padding used by the widest kernel (7)
NUM_OFFSETS = 2 * MAX_PAD + 1   # 7 tap offsets shared by the fused conv

C_PAD = 128               # padded channel dim (lanes)
F_PAD = 128               # padded filter dim per branch
F3 = 3 * F_PAD            # fused filter width (conv3 | conv5 | conv7)
K2 = 2 * C_PAD            # paired contraction depth

TARGET_M = 1024           # desired conv matmul M = batch_tile * chunk_len
MAX_BATCH_TILE = 128      # rows per grid step, upper bound
MAX_CHUNK_LEN = 512       # L chunk length for the running-max pool
VMEM_LIMIT_BYTES = 48 * 1024 * 1024   # > 32 MiB default, < v7x's 64 MiB physical
NEG_INF = -1e30


def _round_up(x, m):
    return -(-x // m) * m


def _mxu_is_256_deep():
    """True on chips with a 256-deep MXU (v6e/v7x) -> pair offsets into K=256."""
    try:
        kind = jax.devices()[0].device_kind.lower()
    except Exception:
        return True
    return not any(g in kind for g in ("v2", "v3", "v4", "v5"))


def _make_kernel(*, seq_len, chunk_len, n_chunks, pair):
    """Builds the fused forward kernel for a fixed (static) configuration."""
    last_valid = seq_len - (n_chunks - 1) * chunk_len   # valid rows in last chunk
    mask_last = last_valid != chunk_len

    def kernel(x_ref, wpair_ref, wlast_ref, bconv_ref, wl1_ref, bl1_ref, wl2_ref,
               out_ref):
        # x_ref:     (tile, n_chunks*chunk_len + 6, 128) bf16 (zero padded)
        # wpair_ref: (3, 256, 384) bf16  -- offsets (2p, 2p+1) stacked along K
        # wlast_ref: (128, 384)    bf16  -- offset 6
        # bconv/bl1: f32 biases, wl1/wl2: bf16 linear weights
        # out_ref:   (tile, 128) f32 log-probs (first NUM_CLASSES lanes real)
        tn = x_ref.shape[0]

        def conv_chunk_max(start, apply_mask):
            # Window covering output positions [start, start+chunk_len) + 6 taps.
            xw = x_ref[:, pl.ds(start, chunk_len + 2 * MAX_PAD), :]   # (tn, Lc+6, 128)

            if pair:
                # K=256 pairing: fills the 256-deep MXU on v6e/v7x.
                xw2 = jnp.concatenate([xw[:, :-1, :], xw[:, 1:, :]], axis=-1)
                acc = jnp.dot(
                    xw2[:, 0:chunk_len, :].reshape(tn * chunk_len, K2),
                    wpair_ref[0], preferred_element_type=jnp.float32)
                for p in range(1, MAX_PAD):
                    xs = xw2[:, 2 * p:2 * p + chunk_len, :].reshape(tn * chunk_len, K2)
                    acc = acc + jnp.dot(xs, wpair_ref[p],
                                        preferred_element_type=jnp.float32)
                xs = xw[:, 2 * MAX_PAD:2 * MAX_PAD + chunk_len, :].reshape(
                    tn * chunk_len, C_PAD)
                acc = acc + jnp.dot(xs, wlast_ref[...],
                                    preferred_element_type=jnp.float32)
            else:
                # 128-deep MXU (v4/v5): 7 K=128 matmuls, no x2 materialization.
                acc = None
                for o in range(NUM_OFFSETS):
                    xs = xw[:, o:o + chunk_len, :].reshape(tn * chunk_len, C_PAD)
                    if o < NUM_OFFSETS - 1:
                        w = wpair_ref[o // 2,
                                      (o % 2) * C_PAD:((o % 2) + 1) * C_PAD, :]
                    else:
                        w = wlast_ref[...]
                    d = jnp.dot(xs, w, preferred_element_type=jnp.float32)
                    acc = d if acc is None else acc + d

            acc3 = acc.reshape(tn, chunk_len, F3)
            if apply_mask:
                # Padded tail positions still see real data through the conv taps;
                # push them to -inf before the (pre-bias) max-pool.
                pos = lax.broadcasted_iota(jnp.int32, (tn, chunk_len, F3), 1)
                acc3 = jnp.where(pos < last_valid, acc3, NEG_INF)
            return jnp.max(acc3, axis=1)                               # (tn, F3)

        # Chunked global max-pool over L (running max keeps VMEM bounded).
        if n_chunks > 1:
            def body(c, run):
                start = pl.multiple_of(c * chunk_len, 8)
                return jnp.maximum(run, conv_chunk_max(start, False))
            pooled = lax.fori_loop(0, n_chunks - 1, body,
                                   jnp.full((tn, F3), NEG_INF, jnp.float32))
            pooled = jnp.maximum(
                pooled, conv_chunk_max((n_chunks - 1) * chunk_len, mask_last))
        else:
            pooled = conv_chunk_max(0, mask_last)

        # Bias + ReLU after the pool (exact transformation).
        feat = jnp.maximum(pooled + bconv_ref[...], 0.0)

        # linear1 -> ReLU -> linear2 (bf16 operands, f32 accumulation).
        h = jnp.dot(feat.astype(jnp.bfloat16), wl1_ref[...],
                    preferred_element_type=jnp.float32)
        h = jnp.maximum(h + bl1_ref[...], 0.0)
        logits = jnp.dot(h.astype(jnp.bfloat16), wl2_ref[...],
                         preferred_element_type=jnp.float32)            # (tn, 128)

        # log_softmax over the real classes only (padded lanes -> -inf).
        lane = lax.broadcasted_iota(jnp.int32, logits.shape, 1)
        lg = jnp.where(lane < NUM_CLASSES, logits, NEG_INF)
        m = jnp.max(lg, axis=-1, keepdims=True)
        z = lg - m
        out_ref[...] = z - jnp.log(jnp.sum(jnp.exp(z), axis=-1, keepdims=True))

    return kernel


def _build_fused_params(params):
    """Pack PyTorch-layout params into the fused/padded kernel layouts."""
    def pad_cf(w_kcf):   # (K, 100, 100) -> (K, 128, 128)
        return jnp.pad(w_kcf, ((0, 0),
                               (0, C_PAD - EMBEDDING_SIZE),
                               (0, F_PAD - NUM_FILTERS)))

    w1p = pad_cf(jnp.transpose(params["conv1_w"], (2, 1, 0)))   # (3, 128, 128)
    w2p = pad_cf(jnp.transpose(params["conv2_w"], (2, 1, 0)))   # (5, 128, 128)
    w3p = pad_cf(jnp.transpose(params["conv3_w"], (2, 1, 0)))   # (7, 128, 128)

    zero_blk = jnp.zeros((C_PAD, F_PAD), jnp.float32)
    blocks = []
    for o in range(NUM_OFFSETS):                 # offset o corresponds to shift o-3
        t1 = w1p[o - 2] if 0 <= o - 2 < KSIZES[0] else zero_blk
        t2 = w2p[o - 1] if 0 <= o - 1 < KSIZES[1] else zero_blk
        t3 = w3p[o]
        blocks.append(jnp.concatenate([t1, t2, t3], axis=1))    # (128, 384)

    # Adjacent offsets stacked along K for the 256-deep MXU path; the unpaired
    # path recovers the per-offset (128, 384) blocks by static ref slicing.
    w_pair = jnp.stack(
        [jnp.concatenate([blocks[2 * p], blocks[2 * p + 1]], axis=0)
         for p in range(MAX_PAD)], axis=0).astype(jnp.bfloat16)         # (3, 256, 384)
    w_last = blocks[NUM_OFFSETS - 1].astype(jnp.bfloat16)               # (128, 384)

    def pad_bias(b):                                                    # (100,)->(1,128)
        return jnp.pad(b, (0, F_PAD - NUM_FILTERS)).reshape(1, F_PAD)

    bconv = jnp.concatenate([pad_bias(params["conv1_b"]),
                             pad_bias(params["conv2_b"]),
                             pad_bias(params["conv3_b"])], axis=1).astype(jnp.float32)

    # linear1: (128, 300) -> (384, 128) with zero rows for padded filters.
    wl1_t = jnp.transpose(params["linear1_w"], (1, 0))                  # (300, 128)
    chunks = [jnp.pad(wl1_t[i * NUM_FILTERS:(i + 1) * NUM_FILTERS],
                      ((0, F_PAD - NUM_FILTERS), (0, 0)))
              for i in range(3)]
    wl1 = jnp.concatenate(chunks, axis=0).astype(jnp.bfloat16)          # (384, 128)
    bl1 = params["linear1_b"].reshape(1, HIDDEN_SIZE).astype(jnp.float32)

    # linear2: (2, 128) -> (128, 128) with zero padded class columns.
    wl2 = jnp.pad(jnp.transpose(params["linear2_w"], (1, 0)),
                  ((0, 0), (0, F_PAD - NUM_CLASSES))).astype(jnp.bfloat16)

    return w_pair, w_last, bconv, wl1, bl1, wl2


def _choose_batch_tile(n_pad8, l_pad, chunk_len):
    """Pick rows-per-grid-step: M = tile*chunk_len >= ~TARGET_M, VMEM-bounded."""
    tile = _round_up(-(-TARGET_M // chunk_len), 8)
    tile = min(tile, MAX_BATCH_TILE)
    # Rough VMEM per batch row: double-buffered bf16 x + f32 conv accumulator
    # + paired-x temporary.
    per_row = (2 * (l_pad + 2 * MAX_PAD) * C_PAD * 2
               + chunk_len * F3 * 4
               + (chunk_len + 2 * MAX_PAD) * K2 * 2)
    while tile > 8 and tile * per_row > 40 * 1024 * 1024:
        tile -= 8
    # Keep >= 2 grid steps when the batch allows it (v7x megacore sharding).
    if n_pad8 >= 16:
        tile = min(tile, max(8, (n_pad8 // 2) // 8 * 8))
    return max(8, min(tile, n_pad8))


def doc_classifier_forward(x_ncl, params, max_chunk_len=MAX_CHUNK_LEN):
    """x_ncl: (N, C=100, L) f32, PyTorch NCL layout. Returns (N, 2) log-probs."""
    n, c, seq_len = x_ncl.shape
    assert c == EMBEDDING_SIZE

    chunk_len = min(_round_up(max_chunk_len, 8), _round_up(seq_len, 8))
    n_chunks = -(-seq_len // chunk_len)
    l_pad = n_chunks * chunk_len
    lpad_total = l_pad + 2 * MAX_PAD

    n_pad8 = _round_up(max(n, 1), 8)
    tile = _choose_batch_tile(n_pad8, l_pad, chunk_len)
    n_pad = _round_up(n_pad8, tile)
    grid = (n_pad // tile,)

    pair = _mxu_is_256_deep()

    # glue: channels-last, pad batch/sequence/channels, cast to bf16 for the MXU.
    x_nlc = jnp.transpose(x_ncl, (0, 2, 1))                               # (N, L, C)
    x_pad = jnp.pad(x_nlc, ((0, n_pad - n),
                            (MAX_PAD, MAX_PAD + l_pad - seq_len),
                            (0, C_PAD - c))).astype(jnp.bfloat16)         # (Npad, Lp+6, 128)

    w_pair, w_last, bconv, wl1, bl1, wl2 = _build_fused_params(params)

    kernel = _make_kernel(seq_len=seq_len, chunk_len=chunk_len,
                          n_chunks=n_chunks, pair=pair)

    flops = (2 * n_pad * l_pad * C_PAD * F3 * NUM_OFFSETS
             + 2 * n_pad * (F3 * HIDDEN_SIZE + HIDDEN_SIZE * F_PAD))
    bytes_accessed = (n_pad * lpad_total * C_PAD * 2 + n_pad * F_PAD * 4
                      + (w_pair.size + w_last.size + wl1.size + wl2.size) * 2
                      + (bconv.size + bl1.size) * 4)
    cost = pl.CostEstimate(flops=int(flops),
                           transcendentals=int(n_pad * F_PAD),
                           bytes_accessed=int(bytes_accessed))

    out = pl.pallas_call(
        kernel,
        out_shape=jax.ShapeDtypeStruct((n_pad, F_PAD), jnp.float32),
        grid=grid,
        in_specs=[
            pl.BlockSpec((tile, lpad_total, C_PAD), lambda i: (i, 0, 0)),
            pl.BlockSpec((MAX_PAD, K2, F3), lambda i: (0, 0, 0)),
            pl.BlockSpec((C_PAD, F3), lambda i: (0, 0)),
            pl.BlockSpec((1, F3), lambda i: (0, 0)),
            pl.BlockSpec((F3, HIDDEN_SIZE), lambda i: (0, 0)),
            pl.BlockSpec((1, HIDDEN_SIZE), lambda i: (0, 0)),
            pl.BlockSpec((HIDDEN_SIZE, F_PAD), lambda i: (0, 0)),
        ],
        out_specs=pl.BlockSpec((tile, F_PAD), lambda i: (i, 0)),
        compiler_params=pltpu.CompilerParams(
            dimension_semantics=("parallel",),
            vmem_limit_bytes=VMEM_LIMIT_BYTES),
        cost_estimate=cost,
    )(x_pad, w_pair, w_last, bconv, wl1, bl1, wl2)

    return out[:n, :NUM_CLASSES]


def _reference_forward(x_ncl, params):
    """Pure-JAX f32 reference (mirrors the PyTorch forward)."""
    x_nlc = jnp.transpose(x_ncl, (0, 2, 1))
    seq_len = x_nlc.shape[1]

    def conv(w, b, k):
        pad = (k - 1) // 2
        xp = jnp.pad(x_nlc, ((0, 0), (pad, pad), (0, 0)))
        wk = jnp.transpose(w, (2, 1, 0))  # (K, C, F)
        out = sum(jnp.einsum("nlc,cf->nlf", xp[:, i:i + seq_len, :], wk[i])
                  for i in range(k)) + b[None, None, :]
        return jnp.max(jax.nn.relu(out), axis=1)

    t1 = conv(params["conv1_w"], params["conv1_b"], 3)
    t2 = conv(params["conv2_w"], params["conv2_b"], 5)
    t3 = conv(params["conv3_w"], params["conv3_b"], 7)
    feat = jnp.concatenate([t1, t2, t3], axis=1)
    h = jax.nn.relu(feat @ params["linear1_w"].T + params["linear1_b"])
    logits = h @ params["linear2_w"].T
    return jax.nn.log_softmax(logits, axis=-1)


def init_params(key):
    """Deterministic init mimicking PyTorch's default uniform(-1/sqrt(fan_in), +)."""
    ks = jax.random.split(key, 9)
    params = {}

    def u(k, shape, fan_in):
        bound = 1.0 / (fan_in ** 0.5)
        return jax.random.uniform(k, shape, jnp.float32, -bound, bound)

    for i, (name, ksize) in enumerate(zip(("conv1", "conv2", "conv3"), KSIZES)):
        fan_in = EMBEDDING_SIZE * ksize
        params[f"{name}_w"] = u(ks[2 * i], (NUM_FILTERS, EMBEDDING_SIZE, ksize), fan_in)
        params[f"{name}_b"] = u(ks[2 * i + 1], (NUM_FILTERS,), fan_in)
    params["linear1_w"] = u(ks[6], (HIDDEN_SIZE, NUM_FILTERS * 3), NUM_FILTERS * 3)
    params["linear1_b"] = u(ks[7], (HIDDEN_SIZE,), NUM_FILTERS * 3)
    params["linear2_w"] = u(ks[8], (NUM_CLASSES, HIDDEN_SIZE), HIDDEN_SIZE)
    return params


if __name__ == "__main__":
    key = jax.random.PRNGKey(0)
    k_params, k_x = jax.random.split(key)
    params = init_params(k_params)

    fwd = jax.jit(doc_classifier_forward, static_argnames=("max_chunk_len",))

    # Primary case: PyTorch NCL layout (batch, embedding_size=100, seq_len).
    batch, seq_len = 2, 16
    x = jax.random.normal(k_x, (batch, EMBEDDING_SIZE, seq_len), jnp.float32)
    out = jax.block_until_ready(fwd(x, params, max_chunk_len=MAX_CHUNK_LEN))
    ref = jax.block_until_ready(_reference_forward(x, params))
    assert out.shape == (batch, NUM_CLASSES)
    # bf16 matmul path -> looser tolerance than the f32 reference.
    assert jnp.allclose(out, ref, atol=5e-2, rtol=5e-2), (out, ref)

    # Exercise the padded-tail masking path (seq_len not a multiple of 8).
    x2 = jax.random.normal(jax.random.PRNGKey(1), (batch, EMBEDDING_SIZE, 20),
                           jnp.float32)
    out2 = jax.block_until_ready(fwd(x2, params, max_chunk_len=MAX_CHUNK_LEN))
    assert jnp.allclose(out2, _reference_forward(x2, params), atol=5e-2, rtol=5e-2)

    # Exercise the chunked running-max path (multiple L chunks + masked tail).
    x3 = jax.random.normal(jax.random.PRNGKey(2), (batch, EMBEDDING_SIZE, 40),
                           jnp.float32)
    out3 = jax.block_until_ready(fwd(x3, params, max_chunk_len=16))
    assert jnp.allclose(out3, _reference_forward(x3, params), atol=5e-2, rtol=5e-2)

    print("KERNEL_OK")
</pallas_src>

<mosaic_0001>
module attributes {stable_mosaic.version = 11 : i64} {
  func.func @kernel(%arg0: i32, %arg1: memref<8x22x128xbf16, #tpu.memory_space<vmem>>, %arg2: memref<3x256x384xbf16, #tpu.memory_space<vmem>>, %arg3: memref<128x384xbf16, #tpu.memory_space<vmem>>, %arg4: memref<1x384xf32, #tpu.memory_space<vmem>>, %arg5: memref<384x128xbf16, #tpu.memory_space<vmem>>, %arg6: memref<1x128xf32, #tpu.memory_space<vmem>>, %arg7: memref<128x128xbf16, #tpu.memory_space<vmem>>, %arg8: memref<8x128xf32, #tpu.memory_space<vmem>>) attributes {dimension_semantics = [#tpu.dimension_semantics<parallel>], iteration_bounds = array<i64: 1>, scalar_prefetch = 0 : i64, scratch_operands = 0 : i64, tpu.core_type = #tpu.core_type<tc>, window_params = [{transform_indices = @transform_0, window_bounds = array<i64: 8, 22, 128>}, {pipeline_mode = #tpu.pipeline_mode<synchronous>, transform_indices = @transform_1, window_bounds = array<i64: 3, 256, 384>}, {pipeline_mode = #tpu.pipeline_mode<synchronous>, transform_indices = @transform_2, window_bounds = array<i64: 128, 384>}, {pipeline_mode = #tpu.pipeline_mode<synchronous>, transform_indices = @transform_3, window_bounds = array<i64: 1, 384>}, {pipeline_mode = #tpu.pipeline_mode<synchronous>, transform_indices = @transform_4, window_bounds = array<i64: 384, 128>}, {pipeline_mode = #tpu.pipeline_mode<synchronous>, transform_indices = @transform_5, window_bounds = array<i64: 1, 128>}, {pipeline_mode = #tpu.pipeline_mode<synchronous>, transform_indices = @transform_6, window_bounds = array<i64: 128, 128>}, {transform_indices = @transform_7, window_bounds = array<i64: 8, 128>}]} {
    %c0 = arith.constant 0 : index
    %c0_0 = arith.constant 0 : index
    %c0_1 = arith.constant 0 : index
    %0 = vector.load %arg1[%c0, %c0_0, %c0_1] : memref<8x22x128xbf16, #tpu.memory_space<vmem>>, vector<8x22x128xbf16>
    %1 = vector.extract_strided_slice %0 {offsets = [0, 0, 0], sizes = [8, 21, 128], strides = [1, 1, 1]} : vector<8x22x128xbf16> to vector<8x21x128xbf16>
    %2 = vector.extract_strided_slice %0 {offsets = [0, 1, 0], sizes = [8, 21, 128], strides = [1, 1, 1]} : vector<8x22x128xbf16> to vector<8x21x128xbf16>
    %3 = tpu.concatenate %1, %2 in 2 : vector<8x21x128xbf16>, vector<8x21x128xbf16> -> vector<8x21x256xbf16>
    %4 = vector.extract_strided_slice %3 {offsets = [0, 0, 0], sizes = [8, 16, 256], strides = [1, 1, 1]} : vector<8x21x256xbf16> to vector<8x16x256xbf16>
    %5 = vector.shape_cast %4 : vector<8x16x256xbf16> to vector<128x256xbf16>
    %c0_2 = arith.constant 0 : index
    %c0_3 = arith.constant 0 : index
    %c0_4 = arith.constant 0 : index
    %6 = vector.load %arg2[%c0_2, %c0_3, %c0_4] : memref<3x256x384xbf16, #tpu.memory_space<vmem>>, vector<1x256x384xbf16>
    %7 = vector.shape_cast %6 : vector<1x256x384xbf16> to vector<256x384xbf16>
    %cst = arith.constant dense<0.000000e+00> : vector<128x384xf32>
    %8 = tpu.matmul %5, %7, %cst {dimension_numbers = #tpu.dot_dimension_numbers<[1], [0], [0], [1], [0, 0, 1, 1], [], []>} : vector<128x256xbf16>, vector<256x384xbf16>, vector<128x384xf32> -> vector<128x384xf32>
    %9 = vector.extract_strided_slice %3 {offsets = [0, 2, 0], sizes = [8, 16, 256], strides = [1, 1, 1]} : vector<8x21x256xbf16> to vector<8x16x256xbf16>
    %10 = vector.shape_cast %9 : vector<8x16x256xbf16> to vector<128x256xbf16>
    %c1 = arith.constant 1 : index
    %c0_5 = arith.constant 0 : index
    %c0_6 = arith.constant 0 : index
    %11 = vector.load %arg2[%c1, %c0_5, %c0_6] : memref<3x256x384xbf16, #tpu.memory_space<vmem>>, vector<1x256x384xbf16>
    %12 = vector.shape_cast %11 : vector<1x256x384xbf16> to vector<256x384xbf16>
    %cst_7 = arith.constant dense<0.000000e+00> : vector<128x384xf32>
    %13 = tpu.matmul %10, %12, %cst_7 {dimension_numbers = #tpu.dot_dimension_numbers<[1], [0], [0], [1], [0, 0, 1, 1], [], []>} : vector<128x256xbf16>, vector<256x384xbf16>, vector<128x384xf32> -> vector<128x384xf32>
    %14 = arith.addf %8, %13 : vector<128x384xf32>
    %15 = vector.extract_strided_slice %3 {offsets = [0, 4, 0], sizes = [8, 16, 256], strides = [1, 1, 1]} : vector<8x21x256xbf16> to vector<8x16x256xbf16>
    %16 = vector.shape_cast %15 : vector<8x16x256xbf16> to vector<128x256xbf16>
    %c2 = arith.constant 2 : index
    %c0_8 = arith.constant 0 : index
    %c0_9 = arith.constant 0 : index
    %17 = vector.load %arg2[%c2, %c0_8, %c0_9] : memref<3x256x384xbf16, #tpu.memory_space<vmem>>, vector<1x256x384xbf16>
    %18 = vector.shape_cast %17 : vector<1x256x384xbf16> to vector<256x384xbf16>
    %cst_10 = arith.constant dense<0.000000e+00> : vector<128x384xf32>
    %19 = tpu.matmul %16, %18, %cst_10 {dimension_numbers = #tpu.dot_dimension_numbers<[1], [0], [0], [1], [0, 0, 1, 1], [], []>} : vector<128x256xbf16>, vector<256x384xbf16>, vector<128x384xf32> -> vector<128x384xf32>
    %20 = arith.addf %14, %19 : vector<128x384xf32>
    %21 = vector.extract_strided_slice %0 {offsets = [0, 6, 0], sizes = [8, 16, 128], strides = [1, 1, 1]} : vector<8x22x128xbf16> to vector<8x16x128xbf16>
    %22 = vector.shape_cast %21 : vector<8x16x128xbf16> to vector<128x128xbf16>
    %c0_11 = arith.constant 0 : index
    %c0_12 = arith.constant 0 : index
    %23 = vector.load %arg3[%c0_11, %c0_12] : memref<128x384xbf16, #tpu.memory_space<vmem>>, vector<128x384xbf16>
    %cst_13 = arith.constant dense<0.000000e+00> : vector<128x384xf32>
    %24 = tpu.matmul %22, %23, %cst_13 {dimension_numbers = #tpu.dot_dimension_numbers<[1], [0], [0], [1], [0, 0, 1, 1], [], []>} : vector<128x128xbf16>, vector<128x384xbf16>, vector<128x384xf32> -> vector<128x384xf32>
    %25 = arith.addf %20, %24 : vector<128x384xf32>
    %26 = vector.shape_cast %25 : vector<128x384xf32> to vector<8x16x384xf32>
    %cst_14 = arith.constant dense<0xFF800000> : vector<8x384xf32>
    %27 = vector.multi_reduction <maximumf>, %26, %cst_14 [1] : vector<8x16x384xf32> to vector<8x384xf32>
    %c0_15 = arith.constant 0 : index
    %c0_16 = arith.constant 0 : index
    %28 = vector.load %arg4[%c0_15, %c0_16] : memref<1x384xf32, #tpu.memory_space<vmem>>, vector<1x384xf32>
    %29 = vector.broadcast %28 : vector<1x384xf32> to vector<8x384xf32>
    %30 = arith.addf %27, %29 : vector<8x384xf32>
    %cst_17 = arith.constant 0.000000e+00 : f32
    %31 = vector.broadcast %cst_17 : f32 to vector<8x384xf32>
    %32 = arith.maximumf %30, %31 : vector<8x384xf32>
    %33 = arith.truncf %32 : vector<8x384xf32> to vector<8x384xbf16>
    %c0_18 = arith.constant 0 : index
    %c0_19 = arith.constant 0 : index
    %34 = vector.load %arg5[%c0_18, %c0_19] : memref<384x128xbf16, #tpu.memory_space<vmem>>, vector<384x128xbf16>
    %cst_20 = arith.constant dense<0.000000e+00> : vector<8x128xf32>
    %35 = tpu.matmul %33, %34, %cst_20 {dimension_numbers = #tpu.dot_dimension_numbers<[1], [0], [0], [1], [0, 0, 1, 1], [], []>} : vector<8x384xbf16>, vector<384x128xbf16>, vector<8x128xf32> -> vector<8x128xf32>
    %c0_21 = arith.constant 0 : index
    %c0_22 = arith.constant 0 : index
    %36 = vector.load %arg6[%c0_21, %c0_22] : memref<1x128xf32, #tpu.memory_space<vmem>>, vector<1x128xf32>
    %37 = vector.broadcast %36 : vector<1x128xf32> to vector<8x128xf32>
    %38 = arith.addf %35, %37 : vector<8x128xf32>
    %cst_23 = arith.constant 0.000000e+00 : f32
    %39 = vector.broadcast %cst_23 : f32 to vector<8x128xf32>
    %40 = arith.maximumf %38, %39 : vector<8x128xf32>
    %41 = arith.truncf %40 : vector<8x128xf32> to vector<8x128xbf16>
    %c0_24 = arith.constant 0 : index
    %c0_25 = arith.constant 0 : index
    %42 = vector.load %arg7[%c0_24, %c0_25] : memref<128x128xbf16, #tpu.memory_space<vmem>>, vector<128x128xbf16>
    %cst_26 = arith.constant dense<0.000000e+00> : vector<8x128xf32>
    %43 = tpu.matmul %41, %42, %cst_26 {dimension_numbers = #tpu.dot_dimension_numbers<[1], [0], [0], [1], [0, 0, 1, 1], [], []>} : vector<8x128xbf16>, vector<128x128xbf16>, vector<8x128xf32> -> vector<8x128xf32>
    %44 = tpu.iota {dimensions = array<i32: 1>} : vector<8x128xi32>
    %c2_i32 = arith.constant 2 : i32
    %45 = vector.broadcast %c2_i32 : i32 to vector<8x128xi32>
    %46 = arith.cmpi slt, %44, %45 : vector<8x128xi32>
    %cst_27 = arith.constant -1.000000e+30 : f32
    %47 = vector.broadcast %cst_27 : f32 to vector<8x128xf32>
    %48 = arith.select %46, %43, %47 : vector<8x128xi1>, vector<8x128xf32>
    %cst_28 = arith.constant dense<0xFF800000> : vector<8xf32>
    %49 = vector.multi_reduction <maximumf>, %48, %cst_28 [1] : vector<8x128xf32> to vector<8xf32>
    %50 = vector.shape_cast %49 : vector<8xf32> to vector<8x1xf32>
    %51 = vector.broadcast %50 : vector<8x1xf32> to vector<8x128xf32>
    %52 = arith.subf %48, %51 : vector<8x128xf32>
    %53 = math.exp %52 : vector<8x128xf32>
    %cst_29 = arith.constant dense<0.000000e+00> : vector<8xf32>
    %54 = vector.multi_reduction <add>, %53, %cst_29 [1] : vector<8x128xf32> to vector<8xf32>
    %55 = vector.shape_cast %54 : vector<8xf32> to vector<8x1xf32>
    %56 = math.log %55 : vector<8x1xf32>
    %57 = vector.broadcast %56 : vector<8x1xf32> to vector<8x128xf32>
    %58 = arith.subf %52, %57 : vector<8x128xf32>
    %c0_30 = arith.constant 0 : index
    %c0_31 = arith.constant 0 : index
    %59 = vector.load %arg8[%c0_30, %c0_31] : memref<8x128xf32, #tpu.memory_space<vmem>>, vector<8x128xf32>
    tpu.vector_store %arg8[%c0_30, %c0_31], %58 {strides = array<i32>} : memref<8x128xf32, #tpu.memory_space<vmem>>, vector<8x128xf32>,
    return
  }
  func.func @transform_0(%arg0: i32) -> (i32, i32, i32) {
    %c0_i32 = arith.constant 0 : i32
    %c0_i32_0 = arith.constant 0 : i32
    %c0_i32_1 = arith.constant 0 : i32
    return %arg0, %c0_i32, %c0_i32_0 : i32, i32, i32
  }
  func.func @transform_1(%arg0: i32) -> (i32, i32, i32) {
    %c0_i32 = arith.constant 0 : i32
    %c0_i32_0 = arith.constant 0 : i32
    %c0_i32_1 = arith.constant 0 : i32
    %c0_i32_2 = arith.constant 0 : i32
    return %c0_i32, %c0_i32_0, %c0_i32_1 : i32, i32, i32
  }
  func.func @transform_2(%arg0: i32) -> (i32, i32) {
    %c0_i32 = arith.constant 0 : i32
    %c0_i32_0 = arith.constant 0 : i32
    %c0_i32_1 = arith.constant 0 : i32
    return %c0_i32, %c0_i32_0 : i32, i32
  }
  func.func @transform_3(%arg0: i32) -> (i32, i32) {
    %c0_i32 = arith.constant 0 : i32
    %c0_i32_0 = arith.constant 0 : i32
    %c0_i32_1 = arith.constant 0 : i32
    return %c0_i32, %c0_i32_0 : i32, i32
  }
  func.func @transform_4(%arg0: i32) -> (i32, i32) {
    %c0_i32 = arith.constant 0 : i32
    %c0_i32_0 = arith.constant 0 : i32
    %c0_i32_1 = arith.constant 0 : i32
    return %c0_i32, %c0_i32_0 : i32, i32
  }
  func.func @transform_5(%arg0: i32) -> (i32, i32) {
    %c0_i32 = arith.constant 0 : i32
    %c0_i32_0 = arith.constant 0 : i32
    %c0_i32_1 = arith.constant 0 : i32
    return %c0_i32, %c0_i32_0 : i32, i32
  }
  func.func @transform_6(%arg0: i32) -> (i32, i32) {
    %c0_i32 = arith.constant 0 : i32
    %c0_i32_0 = arith.constant 0 : i32
    %c0_i32_1 = arith.constant 0 : i32
    return %c0_i32, %c0_i32_0 : i32, i32
  }
  func.func @transform_7(%arg0: i32) -> (i32, i32) {
    %c0_i32 = arith.constant 0 : i32
    %c0_i32_0 = arith.constant 0 : i32
    return %arg0, %c0_i32 : i32, i32
  }
}

</mosaic_0001>

<bundles_post_ra>
// kernel: doc_classifier_forward.1
= control target key start
LH: loop header
LB: loop body
LE: loop exit
PB: predicated region body
PF: predicated region fallthrough
CT: control target
= control target key end

     0   :  { %vm123_vm0 = vsmask.f32 7424  ;;  %vm316_vm1 = vcmask 1046528   ;;  %vm1378_vm2 = vcmask 1045504   ;;  %vm2022_vm3 = vcmask 1040384   ;;  %s5826_s1 = inlined_call_operand.vmem [shape: bf16[3,256,384], index: 1, kind: input, shape index: {}]   ;;  %s5827_s0 = inlined_call_operand.vmem [shape: bf16[8,22,128], index: 0, kind: input, shape index: {}]   ;;  %s5828_s2 = inlined_call_operand.vmem [shape: bf16[128,384], index: 2, kind: input, shape index: {}]   ;;  %s5829_s4 = inlined_call_operand.vmem [shape: bf16[384,128], index: 4, kind: input, shape index: {}]   ;;  %s5830_s3 = inlined_call_operand.vmem [shape: f32[1,384], index: 3, kind: input, shape index: {}]   ;;  %s5831_s6 = inlined_call_operand.vmem [shape: bf16[128,128], index: 6, kind: input, shape index: {}]   ;;  %s5832_s5 = inlined_call_operand.vmem [shape: f32[1,128], index: 5, kind: input, shape index: {}]   ;;  %s5833_s7 = inlined_call_operand.vmem [shape: f32[8,128], index: 7, kind: output, shape index: {}]  }
   0x1   :  { %v4075_v0 = vld [vmem:[%s5826_s1 + $0x184] ss:$12 sps:$4 sm:$0xff]   ;;  %v4077_v1 = vld [vmem:[%s5826_s1 + $0x248] ss:$12 sps:$4 sm:$0xff]   ;;  %v4078_v2 = vld [vmem:[%s5826_s1 + $0x180] ss:$12 sps:$4 sm:$0xff]  }
   0x2   :  { %702 = vmatprep.subr.bf16.mxu0 %v4075_v0  ;;  %3656 = vmatprep.subr.bf16.mxu1 %v4077_v1  ;;  %v4079_v3 = vld [vmem:[%s5826_s1 + $0x188] ss:$12 sps:$4 sm:$0xff]   ;;  %v4082_v5 = vld [vmem:[%s5826_s1 + $0x260] ss:$12 sps:$4 sm:$0xff]   ;;  %v4083_v6 = vld [vmem:[%s5826_s1 + $0x198] ss:$12 sps:$4 sm:$0xff]  }
   0x3   :  { %703 = vmatpush1.bf16.msra.mxu0 %v4078_v2  ;;  %v4080_v4 = vld [vmem:[%s5826_s1 + $0x19c] ss:$12 sps:$4 sm:$0xff]   ;;  %3657 = vmatpush3.bf16.msra.mxu1 %v4079_v3  ;;  %v4084_v7 = vld [vmem:[%s5826_s1 + $0x1a0] ss:$12 sps:$4 sm:$0xff]   ;;  %v4087_v9 = vld [vmem:[%s5826_s1 + $0x278] ss:$12 sps:$4 sm:$0xff]  }
   0x4   :  { %704 = vmatprep.subr.bf16.mxu0 %v4080_v4  ;;  %3658 = vmatprep.subr.bf16.mxu1 %v4082_v5  ;;  %v4085_v8 = vld [vmem:[%s5826_s1 + $0x1b4] ss:$12 sps:$4 sm:$0xff]   ;;  %v4088_v10 = vld [vmem:[%s5826_s1 + $0x1b0] ss:$12 sps:$4 sm:$0xff]   ;;  %v4089_v11 = vld [vmem:[%s5826_s1 + $0x1b8] ss:$12 sps:$4 sm:$0xff]  }
   0x5   :  { %v4090_v12 = vld [vmem:[%s5826_s1 + $0x1cc] ss:$12 sps:$4 sm:$0xff]   ;;  %v4092_v13 = vld [vmem:[%s5826_s1 + $0x290] ss:$12 sps:$4 sm:$0xff]   ;;  %v4093_v14 = vld [vmem:[%s5826_s1 + $0x1c8] ss:$12 sps:$4 sm:$0xff]  }
   0x6   :  { %v4094_v15 = vld [vmem:[%s5826_s1 + $0x1d0] ss:$12 sps:$4 sm:$0xff]   ;;  %v4097_v17 = vld [vmem:[%s5826_s1 + $0x2a8] ss:$12 sps:$4 sm:$0xff]   ;;  %v4098_v18 = vld [vmem:[%s5826_s1 + $0x1e0] ss:$12 sps:$4 sm:$0xff]  }
   0x7   :  { %705 = vmatpush1.bf16.msra.mxu0 %v4083_v6  ;;  %3659 = vmatpush3.bf16.msra.mxu1 %v4084_v7  ;;  %v4095_v16 = vld [vmem:[%s5826_s1 + $0x1e4] ss:$12 sps:$4 sm:$0xff]   ;;  %v4099_v19 = vld [vmem:[%s5826_s1 + $0x1e8] ss:$12 sps:$4 sm:$0xff]   ;;  %v4102_v21 = vld [vmem:[%s5826_s1 + $0x2c0] ss:$12 sps:$4 sm:$0xff]  }
   0x8   :  { %706 = vmatprep.subr.bf16.mxu0 %v4085_v8  ;;  %3660 = vmatprep.subr.bf16.mxu1 %v4087_v9  ;;  %v4100_v20 = vld [vmem:[%s5826_s1 + $0x1fc] ss:$12 sps:$4 sm:$0xff]   ;;  %v4103_v22 = vld [vmem:[%s5826_s1 + $0x1f8] ss:$12 sps:$4 sm:$0xff]   ;;  %v4104_v23 = vld [vmem:[%s5826_s1 + $0x200] ss:$12 sps:$4 sm:$0xff]  }
   0x9   :  { %v4105_v24 = vld [vmem:[%s5826_s1 + $0x214] ss:$12 sps:$4 sm:$0xff]   ;;  %v4107_v25 = vld [vmem:[%s5826_s1 + $0x2d8] ss:$12 sps:$4 sm:$0xff]   ;;  %v4108_v26 = vld [vmem:[%s5826_s1 + $0x210] ss:$12 sps:$4 sm:$0xff]  }
   0xa   :  { %v4109_v27 = vld [vmem:[%s5826_s1 + $0x218] ss:$12 sps:$4 sm:$0xff]   ;;  %v4112_v29 = vld [vmem:[%s5826_s1 + $0x2f0] ss:$12 sps:$4 sm:$0xff]   ;;  %v27_v30 = vld [vmem:[%s5827_s0] sm:$0xf] }
   0xb   :  { %707 = vmatpush1.bf16.msra.mxu0 %v4088_v10  ;;  %3661 = vmatpush3.bf16.msra.mxu1 %v4089_v11  ;;  %v4110_v28 = vld [vmem:[%s5826_s1 + $0x22c] ss:$12 sps:$4 sm:$0xff]   ;;  %v28_v31 = vld [vmem:[%s5827_s0 + $0x4] sm:$0xf]  ;;  %v29_v32 = vld [vmem:[%s5827_s0 + $0x8] sm:$0x7] }
   0xc   :  { %708 = vmatprep.subr.bf16.mxu0 %v4090_v12  ;;  %3662 = vmatprep.subr.bf16.mxu1 %v4092_v13  ;;  %v4113_v33 = vld [vmem:[%s5826_s1 + $0x228] ss:$12 sps:$4 sm:$0xff]   ;;  %v4114_v34 = vld [vmem:[%s5826_s1 + $0x230] ss:$12 sps:$4 sm:$0xff]   ;;  %v4523_v35 = vcombine.low %v27_v30, %v28_v31  ;;  %v4525_v36 = vcombine.low %v29_v32, %v29_v32  ;;  %v4119_v42 = vld [vmem:[%s5826_s1 + $0x240] ss:$12 sps:$4 sm:$0xff]  }
   0xd   :  { %v4117_v37 = vld [vmem:[%s5826_s1 + $0x244] ss:$12 sps:$4 sm:$0xff]   ;;  %v30_v43 = vld [vmem:[%s5827_s0 + $0xc] sm:$0xf]  ;;  %v32_v47 = vld [vmem:[%s5827_s0 + $0x14] sm:$0x7] }
   0xe   :  { %v125_v38 = vshrl.u32 %v4523_v35, 16  ;;  %v127_v39 = vshll.u32 %v4523_v35, 16  ;;  %v132_v40 = vshll.u32 %v4525_v36, 16  ;;  %v136_v41 = vshrl.u32 %v4525_v36, 16  ;;  %v31_v44 = vld [vmem:[%s5827_s0 + $0x10] sm:$0xf] }
   0xf   :  { %709 = vmatpush1.bf16.msra.mxu0 %v4093_v14  ;;  %3663 = vmatpush3.bf16.msra.mxu1 %v4094_v15  ;;  %v4546_v48 = vcombine.low %v30_v43, %v31_v44  ;;  %v317_v49 = vrot.slane %v4523_v35, 1  ;;  %v318_v50 = vrot.slane %v4525_v36, 1  ;;  %v4120_v51 = vld [vmem:[%s5826_s1 + $0x25c] ss:$12 sps:$4 sm:$0xff]   ;;  %v4553_v52 = vcombine.low %v32_v47, %v32_v47  ;;  %v4122_v57 = vld [vmem:[%s5826_s1 + $0x258] ss:$12 sps:$4 sm:$0xff]  }
  0x10   :  { %710 = vmatprep.subr.bf16.mxu0 %v4095_v16  ;;  %3664 = vmatprep.subr.bf16.mxu1 %v4097_v17  ;;  %v129_v45 = vrot.slane %v127_v39, 1  ;;  %v134_v46 = vrot.slane %v132_v40, 1  ;;  %v4125_v60 = vld [vmem:[%s5826_s1 + $0x274] ss:$12 sps:$4 sm:$0xff]   ;;  %v33_v0 = vld [vmem:[%s5827_s0 + $0x18] sm:$0xf] }
  0x11   :  { %v140_v55 = vshrl.u32 %v4546_v48, 16  ;;  %v142_v56 = vshll.u32 %v4546_v48, 16  ;;  %v147_v58 = vshll.u32 %v4553_v52, 16  ;;  %v151_v59 = vshrl.u32 %v4553_v52, 16  ;;  %v34_v1 = vld [vmem:[%s5827_s0 + $0x1c] sm:$0xf] }
  0x12   :  { %v130_v53 = vor.u32 %v129_v45, %v125_v38  ;;  %v4555_v54 = vor.u32 %v136_v41, %v134_v46  ;;  %v35_v4 = vld [vmem:[%s5827_s0 + $0x20] sm:$0x7]  ;;  %v4581_v5 = vcombine.low %v33_v0, %v34_v1  ;;  %v4584_v6 = vsel %vm316_vm1, %v317_v49, %v318_v50  ;;  %v4127_v11 = vld [vmem:[%s5826_s1 + $0x270] ss:$12 sps:$4 sm:$0xff]   ;;  %v4128_v12 = vld [vmem:[%s5826_s1 + $0x28c] ss:$12 sps:$4 sm:$0xff]  }
  0x13   :  { %711 = vmatpush1.bf16.msra.mxu0 %v4098_v18  ;;  %3665 = vmatpush3.bf16.msra.mxu1 %v4099_v19  ;;  %v144_v63 = vrot.slane %v142_v56, 1  ;;  %v149_v3 = vrot.slane %v147_v58, 1  ;;  %v4586_v8 = vcombine.low %v35_v4, %v35_v4  ;;  %v36_v18 = vld [vmem:[%s5827_s0 + $0x24] sm:$0xf]  ;;  %v4130_v31 = vld [vmem:[%s5826_s1 + $0x288] ss:$12 sps:$4 sm:$0xff]  }
  0x14   :  { %712 = vmatprep.subr.bf16.mxu0 %v4100_v20  ;;  %3666 = vmatprep.subr.bf16.mxu1 %v4102_v21  ;;  %v4568_v61 = vsel %vm123_vm0, %v130_v53, %v134_v46  ;;  %v321_v62 = vrot.slane %v4555_v54, 1  ;;  %v155_v13 = vshrl.u32 %v4581_v5, 16  ;;  %v157_v14 = vshll.u32 %v4581_v5, 16  ;;  %v4133_v39 = vld [vmem:[%s5826_s1 + $0x2a4] ss:$12 sps:$4 sm:$0xff]  }
  0x15   :  { %v320_v2 = vrot.slane %v4568_v61, 1  ;;  %v145_v7 = vor.u32 %v144_v63, %v140_v55  ;;  %v4589_v10 = vor.u32 %v151_v59, %v149_v3  ;;  %v162_v16 = vshll.u32 %v4586_v8, 16  ;;  %v39_v47 = vld [vmem:[%s5827_s0 + $0x30] sm:$0xf]  ;;  %v40_v50 = vld [vmem:[%s5827_s0 + $0x34] sm:$0xf] }
  0x16   :  { %v166_v17 = vshrl.u32 %v4586_v8, 16  ;;  %v159_v21 = vrot.slane %v157_v14, 1  ;;  %v330_v40 = vrot.slane %v4586_v8, 1  ;;  %v4135_v55 = vld [vmem:[%s5826_s1 + $0x2a0] ss:$12 sps:$4 sm:$0xff]   ;;  %v4666_v58 = vcombine.low %v39_v47, %v40_v50 }
  0x17   :  { %713 = vmatpush1.bf16.msra.mxu0 %v4103_v22  ;;  %3667 = vmatpush3.bf16.msra.mxu1 %v4104_v23  ;;  %v322_v9 = vsel %vm316_vm1, %v320_v2, %v321_v62  ;;  %v4600_v15 = vsel %vm123_vm0, %v145_v7, %v149_v3  ;;  %v327_v20 = vrot.slane %v4589_v10, 1  ;;  %v37_v22 = vld [vmem:[%s5827_s0 + $0x28] sm:$0xf]  ;;  %v323_v23 = vrot.slane %v4546_v48, 1  ;;  %v4141_v14 = vld [vmem:[%s5826_s1 + $0x2d4] ss:$12 sps:$4 sm:$0xff]  }
  0x18   :  { %714 = vmatprep.subr.bf16.mxu0 %v4105_v24  ;;  %3668 = vmatprep.subr.bf16.mxu1 %v4107_v25  ;;  %v326_v19 = vrot.slane %v4600_v15, 1  ;;  %v324_v24 = vrot.slane %v4553_v52, 1  ;;  %v164_v25 = vrot.slane %v162_v16, 1  ;;  %v4136_v56 = vld [vmem:[%s5826_s1 + $0x2bc] ss:$12 sps:$4 sm:$0xff]   ;;  %v185_v0 = vshrl.u32 %v4666_v58, 16 }
  0x19   :  { %847 = vmatprep.mubr.bf16.mxu1 %v322_v9  ;;  %734 = vmatprep.mubr.bf16.mxu0 %v322_v9  ;;  %v4152_v62 = vld [vmem:[%s5826_s1 + $0xc8] ss:$12 sps:$4 sm:$0xff]   ;;  %v187_v1 = vshll.u32 %v4666_v58, 16  ;;  %v4164_v47 = vld [vmem:[%s5826_s1 + $0xf8] ss:$12 sps:$4 sm:$0xff]   ;;  %vm2023_vm4 = vcmask 1044484  }
  0x1a   :  { %v4629_v32 = vor.u32 %v166_v17, %v164_v25  ;;  %v4644_v43 = vsel %vm316_vm1, %v323_v23, %v324_v24  ;;  %v4153_v9 = vld [vmem:[%s5826_s1 + $0x8] ss:$12 sps:$4 sm:$0xff]   ;;  %v43_v23 = vld [vmem:[%s5827_s0 + $0x40] sm:$0xf]  ;;  %v4151_v50 = vld [vmem:[%s5826_s1 + $0x4] ss:$12 sps:$4 sm:$0xff]  }
  0x1b   :  { %715 = vmatpush1.bf16.msra.mxu0 %v4108_v26  ;;  %3669 = vmatpush3.bf16.msra.mxu1 %v4109_v27  ;;  %v38_v26 = vld [vmem:[%s5827_s0 + $0x2c] sm:$0x7]  ;;  %v4618_v27 = vcombine.low %v36_v18, %v37_v22  ;;  %v42_v22 = vld [vmem:[%s5827_s0 + $0x3c] sm:$0xf]  ;;  %vm5334_vm5 = vmor %vm2022_vm3, %vm2023_vm4  ;;  %vm4377_vm6 = vmmov 0   ;;  %vm2892_vm7 = vcmask 1041409  }
  0x1c   :  { %716 = vmatprep.subr.bf16.mxu0 %v4110_v28  ;;  %3670 = vmatprep.subr.bf16.mxu1 %v4112_v29  ;;  %v4621_v28 = vsel %vm316_vm1, %v326_v19, %v327_v20  ;;  %v160_v29 = vor.u32 %v159_v21, %v155_v13  ;;  %v4623_v30 = vcombine.low %v38_v26, %v38_v26  ;;  %v333_v45 = vrot.slane %v4629_v32, 1  ;;  %v4157_v19 = vld [vmem:[%s5826_s1 + $0xe0] ss:$12 sps:$4 sm:$0xff]  }
  0x1d   :  { %v4158_v21 = vld [vmem:[%s5826_s1 + $0x20] ss:$12 sps:$4 sm:$0xff]   ;;  %v335_v24 = vrot.slane %v4618_v27, 1  ;;  %vm2895_vm8 = vcmask 1042434   ;;  %vm2898_vm9 = vcmask 1043459   ;;  %vm2904_vm10 = vcmask 1045509  }
  0x1e   :  { %v4635_v38 = vsel %vm123_vm0, %v160_v29, %v164_v25  ;;  %v177_v41 = vshll.u32 %v4623_v30, 16  ;;  %v4143_v25 = vld [vmem:[%s5826_s1 + $0x2d0] ss:$12 sps:$4 sm:$0xff]   ;;  %v44_v29 = vld [vmem:[%s5827_s0 + $0x44] sm:$0x7]  ;;  %vm2907_vm11 = vcmask 1046534  }
  0x1f   :  { %717 = vmatpush1.bf16.msra.mxu0 %v4113_v33  ;;  %3671 = vmatpush3.bf16.msra.mxu1 %v4114_v34  ;;  %v329_v33 = vrot.slane %v4581_v5, 1  ;;  %v170_v34 = vshrl.u32 %v4618_v27, 16  ;;  %v332_v44 = vrot.slane %v4635_v38, 1  ;;  %vm2910_vm12 = vcmask 1047559  }
  0x20   :  { %718 = vmatprep.subr.bf16.mxu0 %v4117_v37  ;;  %v172_v37 = vshll.u32 %v4618_v27, 16  ;;  %v179_v49 = vrot.slane %v177_v41, 1  ;;  %3720 = vmatprep.subr.bf16.mxu1 %v4152_v62 }
  0x21   :  { %v4658_v53 = vsel %vm316_vm1, %v332_v44, %v333_v45  ;;  %v4696_v16 = vsel %vm316_vm1, %v329_v33, %v330_v40  ;;  %v336_v33 = vrot.slane %v4623_v30, 1 }
  0x22   :  { %848 = vmatmul.mubr.bf16.vlgmr.msra.gmra.mrb[0].mxu1 %v4584_v6  ;;  %v174_v46 = vrot.slane %v172_v37, 1  ;;  %v4732_v37 = vcombine.low %v44_v29, %v44_v29 }
  0x23   :  { %719 = vmatpush1.bf16.msra.mxu0 %v4119_v42  ;;  %855 = vmatprep.mubr.bf16.mxu1 %v4621_v28  ;;  %v181_v42 = vshrl.u32 %v4623_v30, 16 }
  0x24   :  { %720 = vmatprep.subr.bf16.mxu0 %v4120_v51  ;;  %v41_v51 = vld [vmem:[%s5827_s0 + $0x38] sm:$0x7]  ;;  %3721 = vmatpush3.bf16.msra.mxu1 %v4153_v9  ;;  %v207_v45 = vshll.u32 %v4732_v37, 16  ;;  %v46_v9 = vld [vmem:[%s5827_s0 + $0x4c] sm:$0xf] }
  0x25   :  { %v4668_v59 = vcombine.low %v41_v51, %v41_v51  ;;  %3722 = vmatprep.subr.bf16.mxu1 %v4157_v19  ;;  %v4154_v19 = vld [vmem:[%s5826_s1 + $0x18] ss:$12 sps:$4 sm:$0xff]  }
  0x26   :  { %v209_v51 = vrot.slane %v207_v45, 1 }
  0x27   :  { %721 = vmatpush1.bf16.msra.mxu0 %v4122_v57  ;;  %v175_v57 = vor.u32 %v174_v46, %v170_v34  ;;  %v192_v2 = vshll.u32 %v4668_v59, 16  ;;  %v196_v7 = vshrl.u32 %v4668_v59, 16  ;;  %v4144_v34 = vld [vmem:[%s5826_s1 + $0x2ec] ss:$12 sps:$4 sm:$0xff]   ;;  %v211_v46 = vshrl.u32 %v4732_v37, 16 }
  0x28   :  { %722 = vmatprep.subr.bf16.mxu0 %v4125_v60  ;;  %v4671_v60 = vor.u32 %v181_v42, %v179_v49  ;;  %3723 = vmatpush3.bf16.msra.mxu1 %v4158_v21 }
  0x29   :  { %v4678_v63 = vsel %vm123_vm0, %v175_v57, %v179_v49  ;;  %v194_v13 = vrot.slane %v192_v2, 1  ;;  %3724 = vmatprep.subr.bf16.mxu1 %v4164_v47  ;;  %v4149_v57 = vld [vmem:[%s5826_s1] ss:$12 sps:$4 sm:$0xff]   ;;  %v4169_v2 = vld [vmem:[%s5826_s1 + $0x110] ss:$12 sps:$4 sm:$0xff]  }
  0x2a   :  { %856 = vmatmul.mubr.bf16.gmra.mrb[4].mxu1 %v4644_v43  ;;  %v338_v3 = vrot.slane %v4678_v63, 1  ;;  %v339_v4 = vrot.slane %v4671_v60, 1  ;;  %v4168_v47 = vld [vmem:[%s5826_s1 + $0x4c] ss:$12 sps:$4 sm:$0xff]  }
  0x2b   :  { %723 = vmatpush1.bf16.msra.mxu0 %v4127_v11  ;;  %863 = vmatprep.mubr.bf16.mxu1 %v4658_v53  ;;  %v4138_v11 = vld [vmem:[%s5826_s1 + $0x2b8] ss:$12 sps:$4 sm:$0xff]   ;;  %v4698_v18 = vor.u32 %v196_v7, %v194_v13  ;;  %v45_v7 = vld [vmem:[%s5827_s0 + $0x48] sm:$0xf] }
  0x2c   :  { %724 = vmatprep.subr.bf16.mxu0 %v4128_v12  ;;  %v189_v12 = vrot.slane %v187_v1, 1  ;;  %v4704_v20 = vsel %vm316_vm1, %v338_v3, %v339_v4  ;;  %v4762_v1 = vor.u32 %v211_v46, %v209_v51  ;;  %v4170_v4 = vld [vmem:[%s5826_s1 + $0x50] ss:$12 sps:$4 sm:$0xff]  }
  0x2d   :  { %v345_v40 = vrot.slane %v4698_v18, 1 }
  0x2e   :  { %v190_v17 = vor.u32 %v189_v12, %v185_v0  ;;  %v4156_v12 = vld [vmem:[%s5826_s1 + $0x1c] ss:$12 sps:$4 sm:$0xff]  }
  0x2f   :  { %725 = vmatpush1.bf16.msra.mxu0 %v4130_v31  ;;  %v4725_v31 = vcombine.low %v42_v22, %v43_v23  ;;  %v351_v23 = vrot.slane %v4762_v1, 1 }
  0x30   :  { %726 = vmatprep.subr.bf16.mxu0 %v4133_v39  ;;  %v4720_v26 = vsel %vm123_vm0, %v190_v17, %v194_v13  ;;  %v4146_v39 = vld [vmem:[%s5826_s1 + $0x2e8] ss:$12 sps:$4 sm:$0xff]   ;;  %v47_v13 = vld [vmem:[%s5827_s0 + $0x50] sm:$0x7]  ;;  %v342_v17 = vrot.slane %v4668_v59, 1 }
  0x31   :  { %v200_v41 = vshrl.u32 %v4725_v31, 16  ;;  %v202_v42 = vshll.u32 %v4725_v31, 16  ;;  %v344_v44 = vrot.slane %v4720_v26, 1  ;;  %v4795_v22 = vcombine.low %v47_v13, %v47_v13 }
  0x32   :  { %864 = vmatmul.mubr.bf16.gmra.mrb[8].mxu1 %v4696_v16 }
  0x33   :  { %727 = vmatpush1.bf16.msra.mxu0 %v4135_v55  ;;  %871 = vmatprep.mubr.bf16.mxu1 %v4704_v20  ;;  %v204_v49 = vrot.slane %v202_v42, 1  ;;  %v4165_v55 = vld [vmem:[%s5826_s1 + $0x38] ss:$12 sps:$4 sm:$0xff]   ;;  %v4760_v0 = vsel %vm316_vm1, %v344_v44, %v345_v40  ;;  %v4177_v40 = vld [vmem:[%s5826_s1 + $0x68] ss:$12 sps:$4 sm:$0xff]   ;;  %v347_v42 = vrot.slane %v4725_v31, 1 }
  0x34   :  { %728 = vmatprep.subr.bf16.mxu0 %v4136_v56  ;;  %v4754_v56 = vsel %vm316_vm1, %v335_v24, %v336_v33  ;;  %3725 = vmatpush3.bf16.msra.mxu1 %v4165_v55  ;;  %v4163_v24 = vld [vmem:[%s5826_s1 + $0x34] ss:$12 sps:$4 sm:$0xff]   ;;  %v348_v44 = vrot.slane %v4732_v37, 1 }
  0x35   :  { %v205_v62 = vor.u32 %v204_v49, %v200_v41  ;;  %3726 = vmatprep.subr.bf16.mxu1 %v4169_v2  ;;  %v4176_v33 = vld [vmem:[%s5826_s1 + $0x128] ss:$12 sps:$4 sm:$0xff]   ;;  %v4182_v55 = vld [vmem:[%s5826_s1 + $0x80] ss:$12 sps:$4 sm:$0xff]   ;;  %v49_v2 = vld [vmem:[%s5827_s0 + $0x58] sm:$0xf] }
  0x37   :  { %729 = vmatpush1.bf16.msra.mxu0 %v4138_v11  ;;  %v4768_v3 = vsel %vm123_vm0, %v205_v62, %v209_v51  ;;  %v341_v11 = vrot.slane %v4666_v58, 1  ;;  %v48_v62 = vld [vmem:[%s5827_s0 + $0x54] sm:$0xf] }
  0x38   :  { %730 = vmatprep.subr.bf16.mxu0 %v4141_v14  ;;  %v4787_v14 = vcombine.low %v45_v7, %v46_v9  ;;  %v350_v21 = vrot.slane %v4768_v3, 1  ;;  %3727 = vmatpush3.bf16.msra.mxu1 %v4170_v4  ;;  %v50_v4 = vld [vmem:[%s5827_s0 + $0x5c] sm:$0x7]  ;;  %v4166_v7 = vld [vmem:[%s5826_s1 + $0x48] ss:$12 sps:$4 sm:$0xff]  }
  0x39   :  { %3728 = vmatprep.subr.bf16.mxu1 %v4176_v33  ;;  %v4814_v41 = vsel %vm316_vm1, %v341_v11, %v342_v17  ;;  %v4856_v13 = vcombine.low %v50_v4, %v50_v4  ;;  %v4188_v17 = vld [vmem:[%s5826_s1 + $0x158] ss:$12 sps:$4 sm:$0xff]  }
  0x3a   :  { %872 = vmatmul.mubr.bf16.gmra.mrb[12].mxu1 %v4754_v56  ;;  %v217_v29 = vshll.u32 %v4787_v14, 16  ;;  %v4822_v46 = vsel %vm316_vm1, %v350_v21, %v351_v23 }
  0x3b   :  { %731 = vmatpush1.bf16.msra.mxu0 %v4143_v25  ;;  %879 = vmatprep.mubr.bf16.mxu1 %v4760_v0  ;;  %v215_v25 = vshrl.u32 %v4787_v14, 16  ;;  %v237_v23 = vshll.u32 %v4856_v13, 16 }
  0x3c   :  { %732 = vmatprep.subr.bf16.mxu0 %v4144_v34  ;;  %v226_v34 = vshrl.u32 %v4795_v22, 16  ;;  %3729 = vmatpush3.bf16.msra.mxu1 %v4177_v40 }
  0x3d   :  { %v239_v33 = vrot.slane %v237_v23, 1 }
  0x3f   :  { %733 = vmatpush1.bf16.msra.mxu0 %v4146_v39  ;;  %v219_v39 = vrot.slane %v217_v29, 1 }
  0x40   :  { %1168 = vmatprep.subr.bf16.mxu0 %v4151_v50  ;;  %v4181_v50 = vld [vmem:[%s5826_s1 + $0x140] ss:$12 sps:$4 sm:$0xff]  }
  0x41   :  { %v220_v49 = vor.u32 %v219_v39, %v215_v25  ;;  %3730 = vmatprep.subr.bf16.mxu1 %v4181_v50  ;;  %v4871_v25 = vsel %vm316_vm1, %v347_v42, %v348_v44  ;;  %v4193_v42 = vld [vmem:[%s5826_s1 + $0x170] ss:$12 sps:$4 sm:$0xff]  }
  0x42   :  { %735 = vmatmul.mubr.bf16.vlgmr.msra.gmra.mrb[0].mxu0 %v4584_v6  ;;  %v222_v6 = vshll.u32 %v4795_v22, 16  ;;  %880 = vmatmul.mubr.bf16.gmra.mrb[16].mxu1 %v4814_v41  ;;  %v4180_v44 = vld [vmem:[%s5826_s1 + $0x7c] ss:$12 sps:$4 sm:$0xff]  }
  0x43   :  { %1169 = vmatpush1.bf16.msra.mxu0 %v4149_v57  ;;  %744 = vmatprep.mubr.bf16.mxu0 %v4621_v28  ;;  %v4161_v28 = vld [vmem:[%s5826_s1 + $0x30] ss:$12 sps:$4 sm:$0xff]  }
  0x44   :  { %1170 = vmatprep.subr.bf16.mxu0 %v4156_v12  ;;  %v224_v45 = vrot.slane %v222_v6, 1  ;;  %887 = vmatprep.mubr.bf16.mxu1 %v4822_v46  ;;  %v4854_v12 = vcombine.low %v48_v62, %v49_v2  ;;  %v4178_v62 = vld [vmem:[%s5826_s1 + $0x78] ss:$12 sps:$4 sm:$0xff]   ;;  %v4187_v2 = vld [vmem:[%s5826_s1 + $0x94] ss:$12 sps:$4 sm:$0xff]  }
  0x45   :  { %3731 = vmatpush3.bf16.msra.mxu1 %v4182_v55 }
  0x46   :  { %v4830_v51 = vor.u32 %v226_v34, %v224_v45  ;;  %v4837_v57 = vsel %vm123_vm0, %v220_v49, %v224_v45  ;;  %v232_v21 = vshll.u32 %v4854_v12, 16  ;;  %3732 = vmatprep.subr.bf16.mxu1 %v4188_v17  ;;  %v4173_v34 = vld [vmem:[%s5826_s1 + $0x60] ss:$12 sps:$4 sm:$0xff]   ;;  %v353_v45 = vrot.slane %v4787_v14, 1  ;;  %v4190_v17 = vld [vmem:[%s5826_s1 + $0xa8] ss:$12 sps:$4 sm:$0xff]  }
  0x47   :  { %1171 = vmatpush1.bf16.msra.mxu0 %v4154_v19  ;;  %v356_v9 = vrot.slane %v4837_v57, 1  ;;  %v230_v19 = vshrl.u32 %v4854_v12, 16 }
  0x48   :  { %1172 = vmatprep.subr.bf16.mxu0 %v4163_v24  ;;  %v357_v11 = vrot.slane %v4830_v51, 1  ;;  %v4175_v24 = vld [vmem:[%s5826_s1 + $0x64] ss:$12 sps:$4 sm:$0xff]   ;;  %v234_v29 = vrot.slane %v232_v21, 1  ;;  %v4222_v21 = vld [vmem:[%s5826_s1 + $0x3c8] ss:$12 sps:$4 sm:$0xff]  }
  0x4a   :  { %745 = vmatmul.mubr.bf16.gmra.mrb[4].mxu0 %v4644_v43  ;;  %v241_v43 = vshrl.u32 %v4856_v13, 16  ;;  %v4877_v6 = vsel %vm316_vm1, %v356_v9, %v357_v11  ;;  %v235_v39 = vor.u32 %v234_v29, %v230_v19  ;;  %888 = vmatmul.mubr.bf16.gmra.mrb[20].mxu1 %v4871_v25  ;;  %v359_v9 = vrot.slane %v4854_v12, 1  ;;  %v4197_v19 = vld [vmem:[%s5826_s1 + $0xc4] ss:$12 sps:$4 sm:$0xff]   ;;  %v4223_v29 = vld [vmem:[%s5826_s1 + $0x308] ss:$12 sps:$4 sm:$0xff]  }
  0x4b   :  { %1173 = vmatpush1.bf16.msra.mxu0 %v4161_v28  ;;  %754 = vmatprep.mubr.bf16.mxu0 %v4658_v53  ;;  %v4189_v53 = vld [vmem:[%s5826_s1 + $0x98] ss:$12 sps:$4 sm:$0xff]   ;;  %v4194_v28 = vld [vmem:[%s5826_s1 + $0xb0] ss:$12 sps:$4 sm:$0xff]   ;;  %v360_v11 = vrot.slane %v4856_v13, 1 }
  0x4c   :  { %1174 = vmatprep.subr.bf16.mxu0 %v4168_v47  ;;  %v4882_v40 = vor.u32 %v241_v43, %v239_v33  ;;  %3733 = vmatpush3.bf16.msra.mxu1 %v4189_v53  ;;  %v354_v47 = vrot.slane %v4795_v22, 1  ;;  %v4898_v49 = vsel %vm123_vm0, %v235_v39, %v239_v33  ;;  %v4203_v43 = vld [vmem:[%s5826_s1 + $0xf4] ss:$12 sps:$4 sm:$0xff]   ;;  %v4201_v33 = vld [vmem:[%s5826_s1 + $0xf0] ss:$12 sps:$4 sm:$0xff]  }
  0x4d   :  { %895 = vmatprep.mubr.bf16.mxu1 %v4877_v6  ;;  %3734 = vmatprep.subr.bf16.mxu1 %v4193_v42  ;;  %v362_v50 = vrot.slane %v4898_v49, 1  ;;  %v4935_v23 = vsel %vm316_vm1, %v359_v9, %v360_v11  ;;  %v4228_v53 = vld [vmem:[%s5826_s1 + $0x320] ss:$12 sps:$4 sm:$0xff]   ;;  %v4204_v39 = vld [vmem:[%s5826_s1 + $0x108] ss:$12 sps:$4 sm:$0xff]  }
  0x4e   :  { %v363_v55 = vrot.slane %v4882_v40, 1  ;;  %v355_v4 = vsel %vm316_vm1, %v353_v45, %v354_v47  ;;  %v4209_v42 = vld [vmem:[%s5826_s1 + $0x124] ss:$12 sps:$4 sm:$0xff]   ;;  %v4242_v47 = vld [vmem:[%s5826_s1 + $0x428] ss:$12 sps:$4 sm:$0xff]  }
  0x4f   :  { %1175 = vmatpush1.bf16.msra.mxu0 %v4166_v7  ;;  %v4185_v7 = vld [vmem:[%s5826_s1 + $0x90] ss:$12 sps:$4 sm:$0xff]   ;;  %v4216_v9 = vld [vmem:[%s5826_s1 + $0x168] ss:$12 sps:$4 sm:$0xff]  }
  0x50   :  { %1176 = vmatprep.subr.bf16.mxu0 %v4175_v24  ;;  %3735 = vmatpush3.bf16.msra.mxu1 %v4194_v28  ;;  %v4198_v24 = vld [vmem:[%s5826_s1 + $0xd8] ss:$12 sps:$4 sm:$0xff]   ;;  %v4212_v28 = vld [vmem:[%s5826_s1 + $0x13c] ss:$12 sps:$4 sm:$0xff]  }
  0x51   :  { %3784 = vmatprep.subr.bf16.mxu1 %v4222_v21  ;;  %v4238_v45 = vld [vmem:[%s5826_s1 + $0x350] ss:$12 sps:$4 sm:$0xff]   ;;  %v4219_v21 = vld [vmem:[%s5826_s1 + $0x300] ss:$12 sps:$4 sm:$0xff]  }
  0x52   :  { %755 = vmatmul.mubr.bf16.gmra.mrb[8].mxu0 %v4696_v16  ;;  %v4912_v16 = vsel %vm316_vm1, %v362_v50, %v363_v55  ;;  %896 = vmatmul.mubr.bf16.gmra.mrb[24].mxu1 %v355_v4  ;;  %v4210_v50 = vld [vmem:[%s5826_s1 + $0x138] ss:$12 sps:$4 sm:$0xff]   ;;  %v4215_v55 = vld [vmem:[%s5826_s1 + $0x154] ss:$12 sps:$4 sm:$0xff]  }
  0x53   :  { %1177 = vmatpush1.bf16.msra.mxu0 %v4173_v34  ;;  %764 = vmatprep.mubr.bf16.mxu0 %v4704_v20  ;;  %v4192_v20 = vld [vmem:[%s5826_s1 + $0xac] ss:$12 sps:$4 sm:$0xff]   ;;  %v4221_v11 = vld [vmem:[%s5826_s1 + $0x304] ss:$12 sps:$4 sm:$0xff]  }
  0x54   :  { %1178 = vmatprep.subr.bf16.mxu0 %v4180_v44  ;;  %903 = vmatprep.mubr.bf16.mxu1 %v4912_v16  ;;  %v4232_v34 = vld [vmem:[%s5826_s1 + $0x3f8] ss:$12 sps:$4 sm:$0xff]   ;;  %v4237_v44 = vld [vmem:[%s5826_s1 + $0x410] ss:$12 sps:$4 sm:$0xff]  }
  0x57   :  { %1179 = vmatpush1.bf16.msra.mxu0 %v4178_v62  ;;  %v4243_v62 = vld [vmem:[%s5826_s1 + $0x368] ss:$12 sps:$4 sm:$0xff]  }
  0x58   :  { %1180 = vmatprep.subr.bf16.mxu0 %v4187_v2  ;;  %v4247_v2 = vld [vmem:[%s5826_s1 + $0x440] ss:$12 sps:$4 sm:$0xff]  }
  0x5a   :  { %765 = vmatmul.mubr.bf16.gmra.mrb[12].mxu0 %v4754_v56  ;;  %v4195_v56 = vld [vmem:[%s5826_s1 + $0xc0] ss:$12 sps:$4 sm:$0xff]   ;;  %904 = vmatmul.mubr.bf16.gmra.mrb[28].mxu1 %v4935_v23 }
  0x5b   :  { %1181 = vmatpush1.bf16.msra.mxu0 %v4185_v7  ;;  %774 = vmatprep.mubr.bf16.mxu0 %v4760_v0  ;;  %v4200_v0 = vld [vmem:[%s5826_s1 + $0xdc] ss:$12 sps:$4 sm:$0xff]   ;;  %v4248_v7 = vld [vmem:[%s5826_s1 + $0x380] ss:$12 sps:$4 sm:$0xff]  }
  0x5c   :  { %1182 = vmatprep.subr.bf16.mxu0 %v4192_v20  ;;  %1313 = vmatprep.mubr.bf16.mxu1 %v4568_v61  ;;  %v4252_v20 = vld [vmem:[%s5826_s1 + $0x458] ss:$12 sps:$4 sm:$0xff]  }
  0x5f   :  { %1183 = vmatpush1.bf16.msra.mxu0 %v4190_v17  ;;  %v4253_v17 = vld [vmem:[%s5826_s1 + $0x398] ss:$12 sps:$4 sm:$0xff]  }
  0x60   :  { %1184 = vmatprep.subr.bf16.mxu0 %v4197_v19  ;;  %v4257_v19 = vld [vmem:[%s5826_s1 + $0x470] ss:$12 sps:$4 sm:$0xff]  }
  0x62   :  { %775 = vmatmul.mubr.bf16.gmra.mrb[16].mxu0 %v4814_v41  ;;  %v4227_v41 = vld [vmem:[%s5826_s1 + $0x3e0] ss:$12 sps:$4 sm:$0xff]   ;;  %1314 = vmatmul.mubr.bf16.vlgmr.msra.gmra.mrb[32].mxu1 %v4523_v35 }
  0x63   :  { %1185 = vmatpush1.bf16.msra.mxu0 %v4195_v56  ;;  %784 = vmatprep.mubr.bf16.mxu0 %v4822_v46  ;;  %v4206_v46 = vld [vmem:[%s5826_s1 + $0x10c] ss:$12 sps:$4 sm:$0xff]   ;;  %v4258_v56 = vld [vmem:[%s5826_s1 + $0x3b0] ss:$12 sps:$4 sm:$0xff]  }
  0x64   :  { %1186 = vmatprep.subr.bf16.mxu0 %v4200_v0  ;;  %1321 = vmatprep.mubr.bf16.mxu1 %v4600_v15  ;;  %v5057_v0 = vld [vmem:[%s5828_s2 + $0x8] ss:$12 sps:$4 sm:$0xff]  }
  0x65   :  { %3785 = vmatpush3.bf16.msra.mxu1 %v4223_v29  ;;  %v4229_v29 = vld [vmem:[%s5826_s1 + $0x330] ss:$12 sps:$4 sm:$0xff]  }
  0x66   :  { %3786 = vmatprep.subr.bf16.mxu1 %v4227_v41  ;;  %v4236_v41 = vld [vmem:[%s5826_s1 + $0x34c] ss:$12 sps:$4 sm:$0xff]  }
  0x67   :  { %1187 = vmatpush1.bf16.msra.mxu0 %v4198_v24  ;;  %v4224_v24 = vld [vmem:[%s5826_s1 + $0x318] ss:$12 sps:$4 sm:$0xff]  }
  0x68   :  { %1188 = vmatprep.subr.bf16.mxu0 %v4203_v43  ;;  %v4231_v43 = vld [vmem:[%s5826_s1 + $0x334] ss:$12 sps:$4 sm:$0xff]  }
  0x69   :  { %3787 = vmatpush3.bf16.msra.mxu1 %v4228_v53  ;;  %v4239_v53 = vld [vmem:[%s5826_s1 + $0x360] ss:$12 sps:$4 sm:$0xff]  }
  0x6a   :  { %785 = vmatmul.mubr.bf16.gmra.mrb[20].mxu0 %v4871_v25  ;;  %v4233_v25 = vld [vmem:[%s5826_s1 + $0x338] ss:$12 sps:$4 sm:$0xff]   ;;  %3788 = vmatprep.subr.bf16.mxu1 %v4232_v34  ;;  %v4246_v34 = vld [vmem:[%s5826_s1 + $0x37c] ss:$12 sps:$4 sm:$0xff]  }
  0x6b   :  { %1189 = vmatpush1.bf16.msra.mxu0 %v4201_v33  ;;  %794 = vmatprep.mubr.bf16.mxu0 %v4877_v6  ;;  %v4207_v6 = vld [vmem:[%s5826_s1 + $0x120] ss:$12 sps:$4 sm:$0xff]   ;;  %v4234_v33 = vld [vmem:[%s5826_s1 + $0x348] ss:$12 sps:$4 sm:$0xff]  }
  0x6c   :  { %1190 = vmatprep.subr.bf16.mxu0 %v4206_v46  ;;  %1322 = vmatmul.mubr.bf16.gmra.mrb[36].mxu1 %v4546_v48  ;;  %v4241_v46 = vld [vmem:[%s5826_s1 + $0x364] ss:$12 sps:$4 sm:$0xff]  }
  0x6d   :  { %1329 = vmatprep.mubr.bf16.mxu1 %v4635_v38  ;;  %3789 = vmatpush3.bf16.msra.mxu1 %v4233_v25  ;;  %v4249_v25 = vld [vmem:[%s5826_s1 + $0x390] ss:$12 sps:$4 sm:$0xff]  }
  0x6e   :  { %3790 = vmatprep.subr.bf16.mxu1 %v4237_v44  ;;  %v4256_v44 = vld [vmem:[%s5826_s1 + $0x3ac] ss:$12 sps:$4 sm:$0xff]  }
  0x6f   :  { %1191 = vmatpush1.bf16.msra.mxu0 %v4204_v39  ;;  %v4244_v39 = vld [vmem:[%s5826_s1 + $0x378] ss:$12 sps:$4 sm:$0xff]  }
  0x70   :  { %1192 = vmatprep.subr.bf16.mxu0 %v4209_v42  ;;  %v4251_v42 = vld [vmem:[%s5826_s1 + $0x394] ss:$12 sps:$4 sm:$0xff]  }
  0x71   :  { %3791 = vmatpush3.bf16.msra.mxu1 %v4238_v45  ;;  %v4254_v45 = vld [vmem:[%s5826_s1 + $0x3a8] ss:$12 sps:$4 sm:$0xff]  }
  0x72   :  { %795 = vmatmul.mubr.bf16.gmra.mrb[24].mxu0 %v355_v4  ;;  %3792 = vmatprep.subr.bf16.mxu1 %v4242_v47  ;;  %v4213_v4 = vld [vmem:[%s5826_s1 + $0x150] ss:$12 sps:$4 sm:$0xff]  }
  0x73   :  { %1193 = vmatpush1.bf16.msra.mxu0 %v4207_v6  ;;  %804 = vmatprep.mubr.bf16.mxu0 %v4912_v16  ;;  %v4218_v16 = vld [vmem:[%s5826_s1 + $0x16c] ss:$12 sps:$4 sm:$0xff]   ;;  %v1382_v6 = vrot.slane %v4568_v61, 2  ;;  %v4261_v47 = vld [vmem:[%s5826_s1 + $0x3c4] ss:$12 sps:$4 sm:$0xff]  }
  0x74   :  { %1194 = vmatprep.subr.bf16.mxu0 %v4212_v28  ;;  %1330 = vmatmul.mubr.bf16.gmra.mrb[40].mxu1 %v4581_v5  ;;  %v1383_v28 = vrot.slane %v4555_v54, 2  ;;  %v4259_v54 = vld [vmem:[%s5826_s1 + $0x3c0] ss:$12 sps:$4 sm:$0xff]  }
  0x75   :  { %1337 = vmatprep.mubr.bf16.mxu1 %v4678_v63  ;;  %3793 = vmatpush3.bf16.msra.mxu1 %v4243_v62  ;;  %v1380_v62 = vrot.slane %v4525_v36, 2 }
  0x76   :  { %3794 = vmatprep.subr.bf16.mxu1 %v4247_v2  ;;  %v1388_v2 = vrot.slane %v4600_v15, 2 }
  0x77   :  { %1195 = vmatpush1.bf16.msra.mxu0 %v4210_v50  ;;  %v5118_v50 = vsel %vm1378_vm2, %v1382_v6, %v1383_v28  ;;  %v4301_v6 = vld [vmem:[%s5828_s2 + $0x98] ss:$12 sps:$4 sm:$0xff]   ;;  %v4280_v28 = vld [vmem:[%s5826_s1 + $0x468] ss:$12 sps:$4 sm:$0xff]  }
  0x78   :  { %1196 = vmatprep.subr.bf16.mxu0 %v4215_v55  ;;  %v1379_v55 = vrot.slane %v4523_v35, 2 }
  0x79   :  { %3795 = vmatpush3.bf16.msra.mxu1 %v4248_v7 }
  0x7a   :  { %805 = vmatmul.mubr.bf16.gmra.mrb[28].mxu0 %v4935_v23  ;;  %3796 = vmatprep.subr.bf16.mxu1 %v4252_v20  ;;  %v4226_v23 = vld [vmem:[%s5826_s1 + $0x31c] ss:$12 sps:$4 sm:$0xff]   ;;  %v5141_v36 = vsel %vm1378_vm2, %v1379_v55, %v1380_v62  ;;  %v4270_v20 = vld [vmem:[%s5826_s1 + $0x40c] ss:$12 sps:$4 sm:$0xff]   ;;  %v1413_v55 = vrot.slane %v4762_v1, 2 }
  0x7b   :  { %1197 = vmatpush1.bf16.msra.mxu0 %v4213_v4  ;;  %1200 = vmatprep.mubr.bf16.mxu0 %v4568_v61  ;;  %v4264_v61 = vld [vmem:[%s5826_s1 + $0x3dc] ss:$12 sps:$4 sm:$0xff]   ;;  %v1389_v4 = vrot.slane %v4589_v10, 2  ;;  %v4287_v10 = vld [vmem:[%s5828_s2 + $0x20] ss:$12 sps:$4 sm:$0xff]  }
  0x7c   :  { %1198 = vmatprep.subr.bf16.mxu0 %v4218_v16  ;;  %1338 = vmatmul.mubr.bf16.gmra.mrb[44].mxu1 %v4618_v27  ;;  %v4262_v16 = vld [vmem:[%s5826_s1 + $0x3d8] ss:$12 sps:$4 sm:$0xff]   ;;  %v4293_v1 = vld [vmem:[%s5828_s2 + $0x30] ss:$12 sps:$4 sm:$0xff]  }
  0x7d   :  { %1345 = vmatprep.mubr.bf16.mxu1 %v4720_v26  ;;  %3797 = vmatpush3.bf16.msra.mxu1 %v4253_v17  ;;  %v5144_v7 = vsel %vm1378_vm2, %v1388_v2, %v1389_v4  ;;  %v1394_v17 = vrot.slane %v4635_v38, 2  ;;  %v4288_v62 = vld [vmem:[%s5828_s2 + $0x18] ss:$12 sps:$4 sm:$0xff]   ;;  %v1409_v4 = vrot.slane %v4725_v31, 2 }
  0x7e   :  { %3798 = vmatprep.subr.bf16.mxu1 %v4257_v19  ;;  %v1395_v19 = vrot.slane %v4629_v32, 2  ;;  %v4300_v2 = vld [vmem:[%s5828_s2 + $0x4c] ss:$12 sps:$4 sm:$0xff]  }
  0x7f   :  { %1199 = vmatpush1.bf16.msra.mxu0 %v4216_v9  ;;  %v1385_v9 = vrot.slane %v4546_v48, 2 }
  0x80   :  { %1764 = vmatprep.subr.bf16.mxu0 %v4221_v11  ;;  %v1386_v11 = vrot.slane %v4553_v52, 2  ;;  %v4273_v52 = vld [vmem:[%s5826_s1 + $0x424] ss:$12 sps:$4 sm:$0xff]   ;;  %v5177_v32 = vsel %vm1378_vm2, %v1394_v17, %v1395_v19 }
  0x81   :  { %3799 = vmatpush3.bf16.msra.mxu1 %v4258_v56  ;;  %v4271_v56 = vld [vmem:[%s5826_s1 + $0x420] ss:$12 sps:$4 sm:$0xff]   ;;  %v4351_v17 = vld [vmem:[%s5827_s0 + $0x4] sm:$0xf] }
  0x82   :  { %1201 = vmatmul.mubr.bf16.vlgmr.msra.gmra.mrb[0].mxu0 %v4523_v35  ;;  %3904 = vmatprep.subr.bf16.mxu1 %v5057_v0  ;;  %v4267_v35 = vld [vmem:[%s5826_s1 + $0x3f4] ss:$12 sps:$4 sm:$0xff]   ;;  %v2027_v19 = vrot.slane %v4351_v17, 7 }
  0x83   :  { %1765 = vmatpush1.bf16.msra.mxu0 %v4219_v21  ;;  %1210 = vmatprep.mubr.bf16.mxu0 %v4600_v15  ;;  %v4265_v15 = vld [vmem:[%s5826_s1 + $0x3f0] ss:$12 sps:$4 sm:$0xff]   ;;  %v4291_v21 = vld [vmem:[%s5828_s2 + $0x38] ss:$12 sps:$4 sm:$0xff]  }
  0x84   :  { %1766 = vmatprep.subr.bf16.mxu0 %v4226_v23  ;;  %1346 = vmatmul.mubr.bf16.gmra.mrb[48].mxu1 %v4666_v58  ;;  %v4292_v23 = vld [vmem:[%s5828_s2 + $0x50] ss:$12 sps:$4 sm:$0xff]  }
  0x85   :  { %1353 = vmatprep.mubr.bf16.mxu1 %v4768_v3 }
  0x87   :  { %1767 = vmatpush1.bf16.msra.mxu0 %v4224_v24  ;;  %v1391_v24 = vrot.slane %v4581_v5, 2 }
  0x88   :  { %1768 = vmatprep.subr.bf16.mxu0 %v4231_v43  ;;  %v1392_v43 = vrot.slane %v4586_v8, 2 }
  0x8a   :  { %1211 = vmatmul.mubr.bf16.gmra.mrb[4].mxu0 %v4546_v48  ;;  %v4268_v48 = vld [vmem:[%s5826_s1 + $0x408] ss:$12 sps:$4 sm:$0xff]   ;;  %v5206_v8 = vsel %vm1378_vm2, %v1391_v24, %v1392_v43  ;;  %v1422_v24 = vrot.slane %v4856_v13, 2  ;;  %v4314_v43 = vld [vmem:[%s5828_s2 + $0xac] ss:$12 sps:$4 sm:$0xff]  }
  0x8b   :  { %1769 = vmatpush1.bf16.msra.mxu0 %v4229_v29  ;;  %1220 = vmatprep.mubr.bf16.mxu0 %v4635_v38  ;;  %v5174_v38 = vsel %vm1378_vm2, %v1385_v9, %v1386_v11  ;;  %v1400_v29 = vrot.slane %v4678_v63, 2  ;;  %v1424_v9 = vrot.slane %v4898_v49, 2  ;;  %v1425_v11 = vrot.slane %v4882_v40, 2  ;;  %v4355_v13 = vld [vmem:[%s5827_s0 + $0x1c] sm:$0xf] }
  0x8c   :  { %1770 = vmatprep.subr.bf16.mxu0 %v4236_v41  ;;  %1354 = vmatmul.mubr.bf16.gmra.mrb[52].mxu1 %v4725_v31  ;;  %v1401_v41 = vrot.slane %v4671_v60, 2 }
  0x8d   :  { %1361 = vmatprep.mubr.bf16.mxu1 %v4837_v57 }
  0x8e   :  { %v5209_v60 = vsel %vm1378_vm2, %v1400_v29, %v1401_v41  ;;  %v4354_v29 = vld [vmem:[%s5827_s0 + $0x10] sm:$0xf] }
  0x8f   :  { %1771 = vmatpush1.bf16.msra.mxu0 %v4234_v33  ;;  %v4296_v33 = vld [vmem:[%s5828_s2 + $0x68] ss:$12 sps:$4 sm:$0xff]   ;;  %v2034_v41 = vrot.slane %v4354_v29, 7  ;;  %v4372_v29 = vld [vmem:[%s5827_s0 + $0x58] sm:$0xf] }
  0x90   :  { %1772 = vmatprep.subr.bf16.mxu0 %v4241_v46  ;;  %v4274_v46 = vld [vmem:[%s5826_s1 + $0x438] ss:$12 sps:$4 sm:$0xff]  }
  0x92   :  { %1221 = vmatmul.mubr.bf16.gmra.mrb[8].mxu0 %v4581_v5  ;;  %v4279_v5 = vld [vmem:[%s5826_s1 + $0x454] ss:$12 sps:$4 sm:$0xff]  }
  0x93   :  { %1773 = vmatpush1.bf16.msra.mxu0 %v4239_v53  ;;  %1230 = vmatprep.mubr.bf16.mxu0 %v4678_v63  ;;  %v4297_v63 = vld [vmem:[%s5828_s2 + $0x80] ss:$12 sps:$4 sm:$0xff]   ;;  %v4277_v53 = vld [vmem:[%s5826_s1 + $0x450] ss:$12 sps:$4 sm:$0xff]  }
  0x94   :  { %1774 = vmatprep.subr.bf16.mxu0 %v4246_v34  ;;  %1362 = vmatmul.mubr.bf16.gmra.mrb[56].mxu1 %v4787_v14  ;;  %v4282_v34 = vld [vmem:[%s5826_s1 + $0x46c] ss:$12 sps:$4 sm:$0xff]  }
  0x95   :  { %1369 = vmatprep.mubr.bf16.mxu1 %v4898_v49 }
  0x97   :  { %1775 = vmatpush1.bf16.msra.mxu0 %v4244_v39  ;;  %v1397_v39 = vrot.slane %v4618_v27, 2 }
  0x98   :  { %1776 = vmatprep.subr.bf16.mxu0 %v4251_v42  ;;  %v1398_v42 = vrot.slane %v4623_v30, 2 }
  0x9a   :  { %1231 = vmatmul.mubr.bf16.gmra.mrb[12].mxu0 %v4618_v27  ;;  %v4285_v27 = vld [vmem:[%s5828_s2 + $0x4] ss:$12 sps:$4 sm:$0xff]   ;;  %v5238_v30 = vsel %vm1378_vm2, %v1397_v39, %v1398_v42  ;;  %v4357_v39 = vld [vmem:[%s5827_s0 + $0x14] sm:$0x7] }
  0x9b   :  { %1777 = vmatpush1.bf16.msra.mxu0 %v4249_v25  ;;  %1240 = vmatprep.mubr.bf16.mxu0 %v4720_v26  ;;  %v1406_v25 = vrot.slane %v4720_v26, 2  ;;  %v4302_v26 = vld [vmem:[%s5828_s2 + $0xb0] ss:$12 sps:$4 sm:$0xff]   ;;  %v2037_v42 = vrot.slane %v4357_v39, 7 }
  0x9c   :  { %1778 = vmatprep.subr.bf16.mxu0 %v4256_v44  ;;  %1370 = vmatmul.mubr.bf16.gmra.mrb[60].mxu1 %v4854_v12  ;;  %v1407_v44 = vrot.slane %v4698_v18, 2 }
  0x9d   :  { %1909 = vmatprep.mubr.bf16.mxu1 %v5118_v50 }
  0x9e   :  { %v5241_v18 = vsel %vm1378_vm2, %v1406_v25, %v1407_v44  ;;  %v4358_v25 = vld [vmem:[%s5827_s0 + $0x18] sm:$0xf] }
  0x9f   :  { %1779 = vmatpush1.bf16.msra.mxu0 %v4254_v45  ;;  %v4283_v45 = vld [vmem:[%s5828_s2] ss:$12 sps:$4 sm:$0xff]   ;;  %v3585_v44 = vrot.slane %v4358_v25, 11 }
  0xa0   :  { %1780 = vmatprep.subr.bf16.mxu0 %v4261_v47  ;;  %v4290_v47 = vld [vmem:[%s5828_s2 + $0x1c] ss:$12 sps:$4 sm:$0xff]  }
  0xa2   :  { %1241 = vmatmul.mubr.bf16.gmra.mrb[16].mxu0 %v4666_v58 }
  0xa3   :  { %1781 = vmatpush1.bf16.msra.mxu0 %v4259_v54  ;;  %1250 = vmatprep.mubr.bf16.mxu0 %v4768_v3  ;;  %v1404_v54 = vrot.slane %v4668_v59, 2 }
  0xa4   :  { %1782 = vmatprep.subr.bf16.mxu0 %v4264_v61  ;;  %1910 = vmatmul.mubr.bf16.vlgmr.msra.gmra.mrb[64].mxu1 %v5141_v36  ;;  %v1412_v61 = vrot.slane %v4768_v3, 2 }
  0xa5   :  { %1917 = vmatprep.mubr.bf16.mxu1 %v5144_v7  ;;  %3905 = vmatpush3.bf16.msra.mxu1 %v5057_v0  ;;  %v4276_v0 = vld [vmem:[%s5826_s1 + $0x43c] ss:$12 sps:$4 sm:$0xff]  }
  0xa6   :  { %3906 = vmatprep.subr.bf16.mxu1 %v4287_v10  ;;  %v5270_v3 = vsel %vm1378_vm2, %v1412_v61, %v1413_v55 }
  0xa7   :  { %1783 = vmatpush1.bf16.msra.mxu0 %v4262_v16  ;;  %v1410_v16 = vrot.slane %v4732_v37, 2 }
  0xa8   :  { %1784 = vmatprep.subr.bf16.mxu0 %v4267_v35  ;;  %v1418_v35 = vrot.slane %v4837_v57, 2 }
  0xa9   :  { %3907 = vmatpush3.bf16.msra.mxu1 %v4287_v10  ;;  %v5293_v37 = vsel %vm1378_vm2, %v1409_v4, %v1410_v16  ;;  %v4364_v16 = vld [vmem:[%s5827_s0 + $0x30] sm:$0xf] }
  0xaa   :  { %1251 = vmatmul.mubr.bf16.gmra.mrb[20].mxu0 %v4725_v31  ;;  %3908 = vmatprep.subr.bf16.mxu1 %v4291_v21  ;;  %v4305_v31 = vld [vmem:[%s5828_s2 + $0x64] ss:$12 sps:$4 sm:$0xff]  }
  0xab   :  { %1785 = vmatpush1.bf16.msra.mxu0 %v4265_v15  ;;  %1260 = vmatprep.mubr.bf16.mxu0 %v4837_v57  ;;  %v4308_v57 = vld [vmem:[%s5828_s2 + $0x7c] ss:$12 sps:$4 sm:$0xff]   ;;  %v1415_v15 = vrot.slane %v4787_v14, 2 }
  0xac   :  { %1786 = vmatprep.subr.bf16.mxu0 %v4270_v20  ;;  %1918 = vmatmul.mubr.bf16.gmra.mrb[68].mxu1 %v5174_v38  ;;  %v1416_v20 = vrot.slane %v4795_v22, 2  ;;  %v4311_v22 = vld [vmem:[%s5828_s2 + $0x94] ss:$12 sps:$4 sm:$0xff]  }
  0xad   :  { %1925 = vmatprep.mubr.bf16.mxu1 %v5177_v32  ;;  %3909 = vmatpush3.bf16.msra.mxu1 %v4291_v21  ;;  %v4352_v21 = vld [vmem:[%s5827_s0] sm:$0xf] }
  0xae   :  { %3910 = vmatprep.subr.bf16.mxu1 %v4292_v23  ;;  %v5322_v40 = vsel %vm1378_vm2, %v1415_v15, %v1416_v20 }
  0xaf   :  { %1787 = vmatpush1.bf16.msra.mxu0 %v4268_v48  ;;  %v3583_v48 = vrot.slane %v4352_v21, 11 }
  0xb0   :  { %1788 = vmatprep.subr.bf16.mxu0 %v4273_v52  ;;  %v2029_v52 = vrot.slane %v2027_v19, 4 }
  0xb1   :  { %3911 = vmatpush3.bf16.msra.mxu1 %v4292_v23 }
  0xb2   :  { %1261 = vmatmul.mubr.bf16.gmra.mrb[24].mxu0 %v4787_v14  ;;  %3912 = vmatprep.subr.bf16.mxu1 %v4296_v33  ;;  %v4306_v14 = vld [vmem:[%s5828_s2 + $0x78] ss:$12 sps:$4 sm:$0xff]  }
  0xb3   :  { %1789 = vmatpush1.bf16.msra.mxu0 %v4271_v56  ;;  %1270 = vmatprep.mubr.bf16.mxu0 %v4898_v49  ;;  %v5325_v49 = vsel %vm1378_vm2, %v1424_v9, %v1425_v11  ;;  %v4309_v56 = vld [vmem:[%s5828_s2 + $0x90] ss:$12 sps:$4 sm:$0xff]   ;;  %v4367_v11 = vld [vmem:[%s5827_s0 + $0x4c] sm:$0xf] }
  0xb4   :  { %1790 = vmatprep.subr.bf16.mxu0 %v4276_v0  ;;  %1926 = vmatmul.mubr.bf16.gmra.mrb[72].mxu1 %v5206_v8  ;;  %v1421_v0 = vrot.slane %v4854_v12, 2  ;;  %v2069_v17 = vrot.slane %v4367_v11, 7 }
  0xb5   :  { %1933 = vmatprep.mubr.bf16.mxu1 %v5209_v60  ;;  %3913 = vmatpush3.bf16.msra.mxu1 %v4296_v33  ;;  %v2028_v33 = vsel %vm5334_vm5, %v3583_v48, %v2027_v19  ;;  %v4369_v48 = vld [vmem:[%s5827_s0 + $0x44] sm:$0x7] }
  0xb6   :  { %3914 = vmatprep.subr.bf16.mxu1 %v4297_v63 }
  0xb7   :  { %1791 = vmatpush1.bf16.msra.mxu0 %v4274_v46  ;;  %v2041_v46 = vrot.slane %v4355_v13, 7 }
  0xb8   :  { %1792 = vmatprep.subr.bf16.mxu0 %v4279_v5  ;;  %v4312_v5 = vld [vmem:[%s5828_s2 + $0xa8] ss:$12 sps:$4 sm:$0xff]  }
  0xb9   :  { %3915 = vmatpush3.bf16.msra.mxu1 %v4297_v63  ;;  %v4356_v63 = vld [vmem:[%s5827_s0 + $0xc] sm:$0xf] }
  0xba   :  { %1271 = vmatmul.mubr.bf16.gmra.mrb[28].mxu0 %v4854_v12  ;;  %3916 = vmatprep.subr.bf16.mxu1 %v4301_v6 }
  0xbb   :  { %1793 = vmatpush1.bf16.msra.mxu0 %v4277_v53  ;;  %1796 = vmatprep.mubr.bf16.mxu0 %v5118_v50  ;;  %v1403_v50 = vrot.slane %v4666_v58, 2  ;;  %v4295_v58 = vld [vmem:[%s5828_s2 + $0x34] ss:$12 sps:$4 sm:$0xff]   ;;  %v3584_v53 = vrot.slane %v4356_v63, 11 }
  0xbc   :  { %1794 = vmatprep.subr.bf16.mxu0 %v4282_v34  ;;  %1934 = vmatmul.mubr.bf16.gmra.mrb[76].mxu1 %v5238_v30  ;;  %v2036_v34 = vrot.slane %v2034_v41, 4 }
  0xbd   :  { %1941 = vmatprep.mubr.bf16.mxu1 %v5241_v18  ;;  %3917 = vmatpush3.bf16.msra.mxu1 %v4301_v6  ;;  %v5267_v59 = vsel %vm1378_vm2, %v1403_v50, %v1404_v54  ;;  %v2043_v6 = vrot.slane %v2041_v46, 4  ;;  %v4361_v54 = vld [vmem:[%s5827_s0 + $0x34] sm:$0xf] }
  0xbe   :  { %3918 = vmatprep.subr.bf16.mxu1 %v4302_v26  ;;  %v2055_v61 = vrot.slane %v4361_v54, 7 }
  0xbf   :  { %1795 = vmatpush1.bf16.msra.mxu0 %v4280_v28  ;;  %v4359_v28 = vld [vmem:[%s5827_s0 + $0x20] sm:$0x7] }
  0xc0   :  { %2273 = vmatprep.subr.bf16.mxu0 %v4285_v27  ;;  %v2044_v27 = vrot.slane %v4359_v28, 7 }
  0xc1   :  { %3919 = vmatpush3.bf16.msra.mxu1 %v4302_v26  ;;  %v4360_v26 = vld [vmem:[%s5827_s0 + $0x28] sm:$0xf] }
  0xc2   :  { %1797 = vmatmul.mubr.bf16.vlgmr.msra.gmra.mrb[0].mxu0 %v5141_v36  ;;  %v1419_v36 = vrot.slane %v4830_v51, 2  ;;  %v4303_v51 = vld [vmem:[%s5828_s2 + $0x60] ss:$12 sps:$4 sm:$0xff]   ;;  %v2045_v50 = vsel %vm5334_vm5, %v2043_v6, %v2044_v27 }
  0xc3   :  { %2274 = vmatpush1.bf16.msra.mxu0 %v4283_v45  ;;  %1806 = vmatprep.mubr.bf16.mxu0 %v5144_v7  ;;  %v4298_v7 = vld [vmem:[%s5828_s2 + $0x48] ss:$12 sps:$4 sm:$0xff]   ;;  %v2048_v45 = vrot.slane %v4360_v26, 7 }
  0xc4   :  { %2275 = vmatprep.subr.bf16.mxu0 %v4290_v47  ;;  %1942 = vmatmul.mubr.bf16.gmra.mrb[80].mxu1 %v5267_v59  ;;  %v5296_v10 = vsel %vm1378_vm2, %v1418_v35, %v1419_v36  ;;  %v2042_v47 = vsel %vm5334_vm5, %v3585_v44, %v2041_v46  ;;  %v2057_v35 = vrot.slane %v2055_v61, 4  ;;  %v4365_v36 = vld [vmem:[%s5827_s0 + $0x38] sm:$0x7] }
  0xc5   :  { %1949 = vmatprep.mubr.bf16.mxu1 %v5270_v3 }
  0xc7   :  { %2276 = vmatpush1.bf16.msra.mxu0 %v4288_v62  ;;  %v5400_v62 = vcombine.low %v2042_v47, %v2045_v50 }
  0xc8   :  { %2277 = vmatprep.subr.bf16.mxu0 %v4295_v58  ;;  %v4362_v58 = vld [vmem:[%s5827_s0 + $0x24] sm:$0xf] }
  0xca   :  { %1807 = vmatmul.mubr.bf16.gmra.mrb[4].mxu0 %v5174_v38  ;;  %v4353_v38 = vld [vmem:[%s5827_s0 + $0x8] sm:$0x7] }
  0xcb   :  { %1816 = vmatprep.mubr.bf16.mxu0 %v5177_v32  ;;  %2278 = vmatpush1.bf16.msra.mxu0 %v4293_v1  ;;  %v2030_v32 = vrot.slane %v4353_v38, 7  ;;  %v2050_v1 = vrot.slane %v2048_v45, 4  ;;  %v4370_v38 = vld [vmem:[%s5827_s0 + $0x48] sm:$0xf] }
  0xcc   :  { %2279 = vmatprep.subr.bf16.mxu0 %v4300_v2  ;;  %1950 = vmatmul.mubr.bf16.gmra.mrb[84].mxu1 %v5293_v37  ;;  %v4363_v2 = vld [vmem:[%s5827_s0 + $0x2c] sm:$0x7] }
  0xcd   :  { %1957 = vmatprep.mubr.bf16.mxu1 %v5296_v10  ;;  %v2031_v12 = vsel %vm5334_vm5, %v2029_v52, %v2030_v32  ;;  %v2051_v4 = vrot.slane %v4363_v2, 7  ;;  %v2065_v52 = vrot.slane %v4369_v48, 7  ;;  %v2071_v32 = vrot.slane %v2069_v17, 4 }
  0xcf   :  { %2280 = vmatpush1.bf16.msra.mxu0 %v4298_v7  ;;  %v2058_v7 = vrot.slane %v4365_v36, 7 }
  0xd0   :  { %2281 = vmatprep.subr.bf16.mxu0 %v4305_v31 }
  0xd1   :  { %v2059_v9 = vsel %vm5334_vm5, %v2057_v35, %v2058_v7 }
  0xd2   :  { %1817 = vmatmul.mubr.bf16.gmra.mrb[8].mxu0 %v5206_v8  ;;  %v5364_v8 = vsel %vm1378_vm2, %v1421_v0, %v1422_v24 }
  0xd3   :  { %1826 = vmatprep.mubr.bf16.mxu0 %v5209_v60  ;;  %2282 = vmatpush1.bf16.msra.mxu0 %v4303_v51  ;;  %v5366_v60 = vcombine.low %v2028_v33, %v2031_v12  ;;  %v2052_v51 = vsel %vm5334_vm5, %v2050_v1, %v2051_v4 }
  0xd4   :  { %2283 = vmatprep.subr.bf16.mxu0 %v4308_v57  ;;  %1958 = vmatmul.mubr.bf16.gmra.mrb[88].mxu1 %v5322_v40  ;;  %v4366_v57 = vld [vmem:[%s5827_s0 + $0x40] sm:$0xf] }
  0xd5   :  { %1965 = vmatprep.mubr.bf16.mxu1 %v5325_v49  ;;  %v2062_v15 = vrot.slane %v4366_v57, 7 }
  0xd7   :  { %2284 = vmatpush1.bf16.msra.mxu0 %v4306_v14  ;;  %v2064_v21 = vrot.slane %v2062_v15, 4 }
  0xd8   :  { %2285 = vmatprep.subr.bf16.mxu0 %v4311_v22 }
  0xda   :  { %1827 = vmatmul.mubr.bf16.gmra.mrb[12].mxu0 %v5238_v30  ;;  %v2035_v30 = vsel %vm5334_vm5, %v3584_v53, %v2034_v41  ;;  %v2076_v41 = vrot.slane %v4372_v29, 7 }
  0xdb   :  { %1836 = vmatprep.mubr.bf16.mxu0 %v5241_v18  ;;  %2286 = vmatpush1.bf16.msra.mxu0 %v4309_v56  ;;  %v2038_v18 = vsel %vm5334_vm5, %v2036_v34, %v2037_v42  ;;  %v4371_v56 = vld [vmem:[%s5827_s0 + $0x50] sm:$0x7]  ;;  %v4375_v42 = vmov 0  }
  0xdc   :  { %2287 = vmatprep.subr.bf16.mxu0 %v4314_v43  ;;  %1966 = vmatmul.mubr.bf16.gmra.mrb[92].mxu1 %v5364_v8  ;;  %v5398_v55 = vcombine.low %v2035_v30, %v2038_v18  ;;  %v2072_v0 = vrot.slane %v4371_v56, 7  ;;  %v2066_v43 = vsel %vm5334_vm5, %v2064_v21, %v2065_v52  ;;  %v2078_v53 = vrot.slane %v2076_v41, 4 }
  0xdd   :  { %3920 = vmatprep.mubr.bf16.mxu1 %v5366_v60 }
  0xde   :  { %v2073_v12 = vsel %vm5334_vm5, %v2071_v32, %v2072_v0 }
  0xdf   :  { %2288 = vmatpush1.bf16.msra.mxu0 %v4312_v5  ;;  %v4373_v5 = vld [vmem:[%s5827_s0 + $0x54] sm:$0xf] }
  0xe0   :  { %v3590_v63 = vrot.slane %v4373_v5, 11 }
  0xe2   :  { %1837 = vmatmul.mubr.bf16.gmra.mrb[16].mxu0 %v5267_v59  ;;  %v3586_v59 = vrot.slane %v4362_v58, 11 }
  0xe3   :  { %1846 = vmatprep.mubr.bf16.mxu0 %v5270_v3  ;;  %v3587_v3 = vrot.slane %v4364_v16, 11 }
  0xe4   :  { %3921 = vmatmul.mubr.bf16.vlgmr.msra.gmra.mrb[96].mxu1 %v5398_v55  ;;  %v2049_v31 = vsel %vm5334_vm5, %v3586_v59, %v2048_v45 }
  0xe5   :  { %3924 = vmatprep.mubr.bf16.mxu1 %v5400_v62  ;;  %v2056_v20 = vsel %vm5334_vm5, %v3587_v3, %v2055_v61  ;;  %v5432_v19 = vcombine.low %v2049_v31, %v2052_v51 }
  0xe6   :  { %v5434_v14 = vcombine.low %v2056_v20, %v2059_v9 }
  0xea   :  { %1847 = vmatmul.mubr.bf16.gmra.mrb[20].mxu0 %v5293_v37  ;;  %v4368_v37 = vld [vmem:[%s5827_s0 + $0x3c] sm:$0xf] }
  0xeb   :  { %1856 = vmatprep.mubr.bf16.mxu0 %v5296_v10  ;;  %v3588_v22 = vrot.slane %v4368_v37, 11  ;;  %v3589_v10 = vrot.slane %v4370_v38, 11 }
  0xec   :  { %3925 = vmatmul.mubr.bf16.gmra.mrb[100].mxu1 %v5432_v19 }
  0xed   :  { %3928 = vmatprep.mubr.bf16.mxu1 %v5434_v14  ;;  %v2063_v24 = vsel %vm5334_vm5, %v3588_v22, %v2062_v15  ;;  %v2070_v33 = vsel %vm5334_vm5, %v3589_v10, %v2069_v17 }
  0xee   :  { %v3596_v13 = vcombine.low %v2063_v24, %v2066_v43  ;;  %v5463_v46 = vcombine.low %v2070_v33, %v2073_v12 }
  0xf2   :  { %1857 = vmatmul.mubr.bf16.gmra.mrb[24].mxu0 %v5322_v40  ;;  %v4374_v40 = vld [vmem:[%s5827_s0 + $0x5c] sm:$0x7] }
  0xf3   :  { %1866 = vmatprep.mubr.bf16.mxu0 %v5325_v49  ;;  %v2079_v34 = vrot.slane %v4374_v40, 7  ;;  %v2077_v49 = vsel %vm5334_vm5, %v3590_v63, %v2076_v41 }
  0xf4   :  { %3929 = vmatmul.mubr.bf16.gmra.mrb[104].mxu1 %v3596_v13 }
  0xf5   :  { %3932 = vmatprep.mubr.bf16.mxu1 %v5463_v46  ;;  %v2080_v39 = vsel %vm5334_vm5, %v2078_v53, %v2079_v34  ;;  %v3672_v25 = vpop.f32.mrb[0].mxu1 }
  0xf6   :  { %v5477_v44 = vcombine.low %v2077_v49, %v2080_v39  ;;  %v3673_v6 = vpop.f32.mrb[1].mxu1 }
  0xf7   :  { %v5479_v28 = vadd.f32 %v3673_v6, %v3672_v25  ;;  %v3675_v27 = vpop.f32.mrb[2].mxu1 }
  0xf8   :  { %v3676_v30 = vpop.f32.mrb[3].mxu1 }
  0xf9   :  { %v5481_v18 = vadd.f32 %v3676_v30, %v3675_v27 }
  0xfa   :  { %1867 = vmatmul.mubr.bf16.gmra.mrb[28].mxu0 %v5364_v8 }
  0xfb   :  { %2305 = vmatprep.mubr.bf16.mxu0 %v4375_v42 }
  0xfc   :  { %3933 = vmatmul.mubr.bf16.gmra.mrb[108].mxu1 %v5477_v44 }
  0xfd   :  { %v3678_v23 = vpop.f32.mrb[4].mxu1 }
  0xfe   :  { %v3679_v26 = vpop.f32.mrb[5].mxu1 }
  0xff   :  { %v5485_v8 = vadd.f32 %v3679_v26, %v3678_v23  ;;  %v3681_v45 = vpop.f32.mrb[6].mxu1 }
 0x100   :  { %v3682_v47 = vpop.f32.mrb[7].mxu1 }
 0x101   :  { %v5487_v50 = vadd.f32 %v3682_v47, %v3681_v45 }
 0x102   :  { %2306 = vmatmul.mubr.bf16.vlgmr.msra.gmra.mrb[0].mxu0 %v5366_v60 }
 0x103   :  { %2315 = vmatprep.mubr.bf16.mxu0 %v4375_v42 }
 0x105   :  { %v3684_v54 = vpop.f32.mrb[8].mxu1 }
 0x106   :  { %v3685_v61 = vpop.f32.mrb[9].mxu1 }
 0x107   :  { %v5490_v58 = vadd.f32 %v3685_v61, %v3684_v54  ;;  %v3687_v59 = vpop.f32.mrb[10].mxu1 }
 0x108   :  { %v3688_v1 = vpop.f32.mrb[11].mxu1 }
 0x109   :  { %v5492_v2 = vadd.f32 %v3688_v1, %v3687_v59 }
 0x10a   :  { %2316 = vmatmul.mubr.bf16.gmra.mrb[4].mxu0 %v5398_v55 }
 0x10b   :  { %2325 = vmatprep.mubr.bf16.mxu0 %v4375_v42 }
 0x10d   :  { %v3690_v60 = vpop.f32.mrb[12].mxu1 }
 0x10e   :  { %v3691_v4 = vpop.f32.mrb[13].mxu1 }
 0x10f   :  { %v5495_v16 = vadd.f32 %v3691_v4, %v3690_v60  ;;  %v3693_v3 = vpop.f32.mrb[14].mxu1 }
 0x110   :  { %v3694_v35 = vpop.f32.mrb[15].mxu1 }
 0x111   :  { %v5497_v36 = vadd.f32 %v3694_v35, %v3693_v3 }
 0x112   :  { %2326 = vmatmul.mubr.bf16.gmra.mrb[8].mxu0 %v5400_v62 }
 0x113   :  { %2335 = vmatprep.mubr.bf16.mxu0 %v4375_v42 }
 0x115   :  { %v3696_v55 = vpop.f32.mrb[16].mxu1 }
 0x116   :  { %v3697_v7 = vpop.f32.mrb[17].mxu1 }
 0x117   :  { %v5500_v31 = vadd.f32 %v3697_v7, %v3696_v55  ;;  %v3699_v51 = vpop.f32.mrb[18].mxu1 }
 0x118   :  { %v3700_v57 = vpop.f32.mrb[19].mxu1 }
 0x119   :  { %v5502_v15 = vadd.f32 %v3700_v57, %v3699_v51 }
 0x11a   :  { %2336 = vmatmul.mubr.bf16.gmra.mrb[12].mxu0 %v5432_v19 }
 0x11b   :  { %2345 = vmatprep.mubr.bf16.mxu0 %v4375_v42 }
 0x11d   :  { %v3702_v62 = vpop.f32.mrb[20].mxu1 }
 0x11e   :  { %v3703_v20 = vpop.f32.mrb[21].mxu1 }
 0x11f   :  { %v5505_v9 = vadd.f32 %v3703_v20, %v3702_v62  ;;  %v3705_v11 = vpop.f32.mrb[22].mxu1 }
 0x120   :  { %v3706_v17 = vpop.f32.mrb[23].mxu1 }
 0x121   :  { %v5507_v37 = vadd.f32 %v3706_v17, %v3705_v11 }
 0x122   :  { %2346 = vmatmul.mubr.bf16.gmra.mrb[16].mxu0 %v5434_v14 }
 0x123   :  { %2355 = vmatprep.mubr.bf16.mxu0 %v4375_v42 }
 0x125   :  { %v3708_v19 = vpop.f32.mrb[24].mxu1 }
 0x126   :  { %v3709_v22 = vpop.f32.mrb[25].mxu1 }
 0x127   :  { %v5509_v21 = vadd.f32 %v3709_v22, %v3708_v19  ;;  %v3711_v48 = vpop.f32.mrb[26].mxu1 }
 0x128   :  { %v3712_v52 = vpop.f32.mrb[27].mxu1 }
 0x129   :  { %v5511_v38 = vadd.f32 %v3712_v52, %v3711_v48 }
 0x12a   :  { %2356 = vmatmul.mubr.bf16.gmra.mrb[20].mxu0 %v3596_v13 }
 0x12b   :  { %2365 = vmatprep.mubr.bf16.mxu0 %v4375_v42 }
 0x12d   :  { %v3714_v14 = vpop.f32.mrb[28].mxu1 }
 0x12e   :  { %v3715_v10 = vpop.f32.mrb[29].mxu1 }
 0x12f   :  { %v5514_v32 = vadd.f32 %v3715_v10, %v3714_v14  ;;  %v3717_v56 = vpop.f32.mrb[30].mxu1 }
 0x130   :  { %v3718_v0 = vpop.f32.mrb[31].mxu1 }
 0x131   :  { %v5516_v24 = vadd.f32 %v3718_v0, %v3717_v56 }
 0x132   :  { %2366 = vmatmul.mubr.bf16.gmra.mrb[24].mxu0 %v5463_v46 }
 0x133   :  { %2375 = vmatprep.mubr.bf16.mxu0 %v4375_v42 }
 0x135   :  { %v3736_v43 = vpop.f32.mrb[32].mxu1 }
 0x136   :  { %v3737_v29 = vpop.f32.mrb[33].mxu1 }
 0x137   :  { %v3738_v41 = vadd.f32 %v3737_v29, %v3736_v43  ;;  %v3739_v33 = vpop.f32.mrb[34].mxu1 }
 0x138   :  { %v3740_v12 = vpop.f32.mrb[35].mxu1 }
 0x139   :  { %v5520_v13 = vadd.f32 %v3738_v41, %v5479_v28  ;;  %v3741_v46 = vadd.f32 %v3740_v12, %v3739_v33 }
 0x13a   :  { %2376 = vmatmul.mubr.bf16.gmra.mrb[28].mxu0 %v5477_v44 }
 0x13b   :  { %v5523_v5 = vadd.f32 %v3741_v46, %v5481_v18 }
 0x13f   :  { %v3742_v63 = vpop.f32.mrb[36].mxu1 }
 0x140   :  { %v3743_v53 = vpop.f32.mrb[37].mxu1 }
 0x141   :  { %v3744_v40 = vadd.f32 %v3743_v53, %v3742_v63  ;;  %v3745_v34 = vpop.f32.mrb[38].mxu1 }
 0x142   :  { %v3746_v49 = vpop.f32.mrb[39].mxu1 }
 0x143   :  { %v5526_v39 = vadd.f32 %v3744_v40, %v5485_v8  ;;  %v3747_v42 = vadd.f32 %v3746_v49, %v3745_v34 }
 0x145   :  { %v5529_v25 = vadd.f32 %v3747_v42, %v5487_v50 }
 0x147   :  { %v3748_v44 = vpop.f32.mrb[40].mxu1 }
 0x148   :  { %v3749_v6 = vpop.f32.mrb[41].mxu1 }
 0x149   :  { %v3750_v28 = vadd.f32 %v3749_v6, %v3748_v44  ;;  %v3751_v27 = vpop.f32.mrb[42].mxu1 }
 0x14a   :  { %v3752_v30 = vpop.f32.mrb[43].mxu1 }
 0x14b   :  { %v5532_v18 = vadd.f32 %v3750_v28, %v5490_v58  ;;  %v3753_v23 = vadd.f32 %v3752_v30, %v3751_v27 }
 0x14d   :  { %v5535_v26 = vadd.f32 %v3753_v23, %v5492_v2 }
 0x14f   :  { %v3754_v45 = vpop.f32.mrb[44].mxu1 }
 0x150   :  { %v3755_v47 = vpop.f32.mrb[45].mxu1 }
 0x151   :  { %v3756_v8 = vadd.f32 %v3755_v47, %v3754_v45  ;;  %v3757_v54 = vpop.f32.mrb[46].mxu1 }
 0x152   :  { %v3758_v61 = vpop.f32.mrb[47].mxu1 }
 0x153   :  { %v5538_v50 = vadd.f32 %v3756_v8, %v5495_v16  ;;  %v3759_v59 = vadd.f32 %v3758_v61, %v3757_v54  ;;  %v4315_v54 = vld [vmem:[%s5829_s4 + $0x40] sm:$0xff]  }
 0x154   :  { %3864 = vmatprep.subr.bf16.mxu1 %v4315_v54 }
 0x155   :  { %v5541_v1 = vadd.f32 %v3759_v59, %v5497_v36 }
 0x157   :  { %v3760_v60 = vpop.f32.mrb[48].mxu1 }
 0x158   :  { %v3761_v4 = vpop.f32.mrb[49].mxu1 }
 0x159   :  { %v3762_v58 = vadd.f32 %v3761_v4, %v3760_v60  ;;  %v3763_v3 = vpop.f32.mrb[50].mxu1 }
 0x15a   :  { %v3764_v35 = vpop.f32.mrb[51].mxu1 }
 0x15b   :  { %v5544_v2 = vadd.f32 %v3762_v58, %v5500_v31  ;;  %v3765_v55 = vadd.f32 %v3764_v35, %v3763_v3  ;;  %v4318_v58 = vld [vmem:[%s5829_s4 + $0x8] sm:$0xff]  }
 0x15d   :  { %v5547_v7 = vadd.f32 %v3765_v55, %v5502_v15  ;;  %v4319_v55 = vld [vmem:[%s5829_s4 + $0x50] sm:$0xff]  }
 0x15f   :  { %v3766_v51 = vpop.f32.mrb[52].mxu1 }
 0x160   :  { %v3767_v57 = vpop.f32.mrb[53].mxu1 }
 0x161   :  { %v3768_v16 = vadd.f32 %v3767_v57, %v3766_v51  ;;  %v3769_v62 = vpop.f32.mrb[54].mxu1  ;;  %v4320_v57 = vld [vmem:[%s5829_s4 + $0x10] sm:$0xff]  }
 0x162   :  { %v3770_v20 = vpop.f32.mrb[55].mxu1 }
 0x163   :  { %v5550_v36 = vadd.f32 %v3768_v16, %v5505_v9  ;;  %v3771_v11 = vadd.f32 %v3770_v20, %v3769_v62 }
 0x165   :  { %v5553_v17 = vadd.f32 %v3771_v11, %v5507_v37 }
 0x167   :  { %v3772_v19 = vpop.f32.mrb[56].mxu1 }
 0x168   :  { %v3773_v22 = vpop.f32.mrb[57].mxu1 }
 0x169   :  { %v3774_v31 = vadd.f32 %v3773_v22, %v3772_v19  ;;  %v3775_v48 = vpop.f32.mrb[58].mxu1  ;;  %v4322_v19 = vld [vmem:[%s5829_s4 + $0x18] sm:$0xff]  }
 0x16a   :  { %v3776_v52 = vpop.f32.mrb[59].mxu1 }
 0x16b   :  { %v5556_v15 = vadd.f32 %v3774_v31, %v5509_v21  ;;  %v3777_v14 = vadd.f32 %v3776_v52, %v3775_v48  ;;  %v4323_v48 = vld [vmem:[%s5829_s4 + $0x60] sm:$0xff]  }
 0x16d   :  { %v5559_v10 = vadd.f32 %v3777_v14, %v5511_v38  ;;  %v4324_v14 = vld [vmem:[%s5829_s4 + $0x20] sm:$0xff]  }
 0x16f   :  { %v3778_v56 = vpop.f32.mrb[60].mxu1 }
 0x170   :  { %v3779_v0 = vpop.f32.mrb[61].mxu1 }
 0x171   :  { %v3780_v9 = vadd.f32 %v3779_v0, %v3778_v56  ;;  %v3781_v43 = vpop.f32.mrb[62].mxu1 }
 0x172   :  { %v3782_v29 = vpop.f32.mrb[63].mxu1 }
 0x173   :  { %v5562_v37 = vadd.f32 %v3780_v9, %v5514_v32  ;;  %v3783_v41 = vadd.f32 %v3782_v29, %v3781_v43  ;;  %v4326_v29 = vld [vmem:[%s5829_s4 + $0x28] sm:$0xff]  }
 0x175   :  { %v5565_v33 = vadd.f32 %v3783_v41, %v5516_v24  ;;  %v4327_v41 = vld [vmem:[%s5829_s4 + $0x70] sm:$0xff]  }
 0x177   :  { %v3800_v12 = vpop.f32.mrb[64].mxu1 }
 0x178   :  { %v3801_v46 = vpop.f32.mrb[65].mxu1 }
 0x179   :  { %v3802_v21 = vadd.f32 %v3801_v46, %v3800_v12  ;;  %v3803_v63 = vpop.f32.mrb[66].mxu1 }
 0x17a   :  { %v3804_v53 = vpop.f32.mrb[67].mxu1 }
 0x17b   :  { %v3805_v40 = vadd.f32 %v3804_v53, %v3803_v63  ;;  %v5568_v38 = vadd.f32 %v3802_v21, %v5520_v13  ;;  %v4328_v21 = vld [vmem:[%s5829_s4 + $0x30] sm:$0xff]   ;;  %v4329_v63 = vld [vmem:[%s5829_s4 + $0x78] sm:$0xff]  }
 0x17d   :  { %v5571_v34 = vadd.f32 %v3805_v40, %v5523_v5 }
 0x17f   :  { %v3806_v49 = vpop.f32.mrb[68].mxu1 }
 0x180   :  { %v3807_v42 = vpop.f32.mrb[69].mxu1 }
 0x181   :  { %v3808_v32 = vadd.f32 %v3807_v42, %v3806_v49  ;;  %v3809_v44 = vpop.f32.mrb[70].mxu1 }
 0x182   :  { %v3810_v6 = vpop.f32.mrb[71].mxu1 }
 0x183   :  { %v3811_v28 = vadd.f32 %v3810_v6, %v3809_v44  ;;  %v5574_v24 = vadd.f32 %v3808_v32, %v5526_v39  ;;  %v4316_v39 = vld [vmem:[%s5829_s4] sm:$0xff]   ;;  %v4376_v44 = vmov 0.0  }
 0x184   :  { %3865 = vmatpush3.bf16.msra.mxu1 %v4316_v39  ;;  %3956 = vmatprep.subr.bf16.mxu0 %v4376_v44 }
 0x185   :  { %v5577_v27 = vadd.f32 %v3811_v28, %v5529_v25  ;;  %3972 = vmatprep.mubr.msk.bf16.mxu0 %vm4377_vm6, %v4376_v44 }
 0x187   :  { %v3812_v30 = vpop.f32.mrb[72].mxu1 }
 0x188   :  { %v3813_v23 = vpop.f32.mrb[73].mxu1 }
 0x189   :  { %v3814_v45 = vadd.f32 %v3813_v23, %v3812_v30  ;;  %v3815_v13 = vpop.f32.mrb[74].mxu1 }
 0x18a   :  { %v3816_v47 = vpop.f32.mrb[75].mxu1 }
 0x18b   :  { %v3817_v8 = vadd.f32 %v3816_v47, %v3815_v13  ;;  %v5580_v5 = vadd.f32 %v3814_v45, %v5532_v18  ;;  %v4317_v18 = vld [vmem:[%s5829_s4 + $0x48] sm:$0xff]  }
 0x18c   :  { %3866 = vmatprep.subr.bf16.mxu1 %v4317_v18 }
 0x18d   :  { %v5586_v61 = vadd.f32 %v3817_v8, %v5535_v26  ;;  %3867 = vmatpush3.bf16.msra.mxu1 %v4318_v58  ;;  %v2701_v58 = vlaneseq }
 0x18e   :  { %3868 = vmatprep.subr.bf16.mxu1 %v4319_v55 }
 0x18f   :  { %v3818_v25 = vpop.f32.mrb[76].mxu1 }
 0x190   :  { %v3819_v59 = vpop.f32.mrb[77].mxu1 }
 0x191   :  { %v3820_v60 = vadd.f32 %v3819_v59, %v3818_v25  ;;  %v3821_v4 = vpop.f32.mrb[78].mxu1  ;;  %3869 = vmatpush3.bf16.msra.mxu1 %v4320_v57 }
 0x192   :  { %v3822_v26 = vpop.f32.mrb[79].mxu1 }
 0x193   :  { %v3823_v3 = vadd.f32 %v3822_v26, %v3821_v4  ;;  %v5598_v35 = vadd.f32 %v3820_v60, %v5538_v50  ;;  %v4321_v50 = vld [vmem:[%s5829_s4 + $0x58] sm:$0xff]  }
 0x194   :  { %3870 = vmatprep.subr.bf16.mxu1 %v4321_v50 }
 0x195   :  { %v5604_v51 = vadd.f32 %v3823_v3, %v5541_v1  ;;  %3871 = vmatpush3.bf16.msra.mxu1 %v4322_v19 }
 0x196   :  { %3872 = vmatprep.subr.bf16.mxu1 %v4323_v48  ;;  %v5679_v48 = vld [vmem:[%s5830_s3] sm:$0x7] }
 0x197   :  { %v3824_v16 = vpop.f32.mrb[80].mxu1 }
 0x198   :  { %v3825_v62 = vpop.f32.mrb[81].mxu1 }
 0x199   :  { %v3826_v20 = vadd.f32 %v3825_v62, %v3824_v16  ;;  %v3827_v11 = vpop.f32.mrb[82].mxu1  ;;  %3873 = vmatpush3.bf16.msra.mxu1 %v4324_v14  ;;  %v5670_v16 = vshrl.u32 %v2701_v58, 7 }
 0x19a   :  { %v3828_v1 = vpop.f32.mrb[83].mxu1 }
 0x19b   :  { %v3829_v22 = vadd.f32 %v3828_v1, %v3827_v11  ;;  %v5616_v31 = vadd.f32 %v3826_v20, %v5544_v2  ;;  %v4325_v2 = vld [vmem:[%s5829_s4 + $0x68] sm:$0xff]   ;;  %v2711_v1 = vsub.s32 2, %v5670_v16 }
 0x19c   :  { %3874 = vmatprep.subr.bf16.mxu1 %v4325_v2 }
 0x19d   :  { %v5622_v52 = vadd.f32 %v3829_v22, %v5547_v7  ;;  %3875 = vmatpush3.bf16.msra.mxu1 %v4326_v29 }
 0x19e   :  { %3876 = vmatprep.subr.bf16.mxu1 %v4327_v41 }
 0x19f   :  { %v3830_v56 = vpop.f32.mrb[84].mxu1 }
 0x1a0   :  { %v3831_v0 = vpop.f32.mrb[85].mxu1 }
 0x1a1   :  { %v3832_v9 = vadd.f32 %v3831_v0, %v3830_v56  ;;  %v3833_v43 = vpop.f32.mrb[86].mxu1  ;;  %3877 = vmatpush3.bf16.msra.mxu1 %v4328_v21 }
 0x1a2   :  { %v3834_v7 = vpop.f32.mrb[87].mxu1  ;;  %3878 = vmatprep.subr.bf16.mxu1 %v4329_v63 }
 0x1a3   :  { %v3835_v12 = vadd.f32 %v3834_v7, %v3833_v43  ;;  %v5637_v46 = vadd.f32 %v3832_v9, %v5550_v36  ;;  %v4330_v36 = vld [vmem:[%s5829_s4 + $0x38] sm:$0xff]   ;;  %v5683_v43 = vrot.slane %v5679_v48, %v2711_v1 }
 0x1a5   :  { %v5646_v53 = vadd.f32 %v3835_v12, %v5553_v17  ;;  %3879 = vmatpush3.bf16.msra.mxu1 %v4330_v36 }
 0x1a6   :  { %3936 = vmatprep.subr.bf16.mxu1 %v4376_v44 }
 0x1a7   :  { %v3836_v40 = vpop.f32.mrb[88].mxu1 }
 0x1a8   :  { %v3837_v49 = vpop.f32.mrb[89].mxu1 }
 0x1a9   :  { %v3838_v42 = vadd.f32 %v3837_v49, %v3836_v40  ;;  %v3839_v32 = vpop.f32.mrb[90].mxu1 }
 0x1aa   :  { %v3840_v6 = vpop.f32.mrb[91].mxu1 }
 0x1ab   :  { %v3841_v28 = vadd.f32 %v3840_v6, %v3839_v32  ;;  %v5653_v30 = vadd.f32 %v3838_v42, %v5556_v15 }
 0x1ad   :  { %v5657_v17 = vadd.f32 %v3841_v28, %v5559_v10 }
 0x1af   :  { %v3842_v23 = vpop.f32.mrb[92].mxu1 }
 0x1b0   :  { %v3843_v45 = vpop.f32.mrb[93].mxu1 }
 0x1b1   :  { %v3844_v13 = vadd.f32 %v3843_v45, %v3842_v23  ;;  %v3845_v47 = vpop.f32.mrb[94].mxu1 }
 0x1b2   :  { %v3846_v8 = vpop.f32.mrb[95].mxu1 }
 0x1b3   :  { %v3847_v54 = vadd.f32 %v3846_v8, %v3845_v47  ;;  %v5660_v39 = vadd.f32 %v3844_v13, %v5562_v37 }
 0x1b5   :  { %v5663_v25 = vadd.f32 %v3847_v54, %v5565_v33 }
 0x1b7   :  { %v3922_v15 = vpop.f32.mrb[96].mxu1 }
 0x1b8   :  { %v2491_v59 = vadd.f32 %v3922_v15, %v5574_v24  ;;  %v2420_v18 = vpop.f32.mrb[97].mxu1 }
 0x1b9   :  { %v2485_v60 = vadd.f32 %v2420_v18, %v5568_v38  ;;  %v3923_v10 = vpop.f32.mrb[98].mxu1 }
 0x1ba   :  { %v2494_v4 = vadd.f32 %v3923_v10, %v5577_v27  ;;  %v2423_v26 = vpop.f32.mrb[99].mxu1 }
 0x1bb   :  { %v2488_v3 = vadd.f32 %v2423_v26, %v5571_v34 }
 0x1bc   :  { %v2566_v55 = vmax.f32 %v2491_v59, %v2494_v4 }
 0x1bd   :  { %v2545_v57 = vmax.f32 %v2485_v60, %v2488_v3 }
 0x1be   :  { %v2567_v37 = vrot.slane %v2566_v55, 4 }
 0x1bf   :  { %v2546_v33 = vrot.slane %v2545_v57, 4  ;;  %v3926_v62 = vpop.f32.mrb[100].mxu1 }
 0x1c0   :  { %v2568_v50 = vmax.f32 %v2566_v55, %v2567_v37  ;;  %v2503_v24 = vadd.f32 %v3926_v62, %v5598_v35  ;;  %v2436_v20 = vpop.f32.mrb[101].mxu1 }
 0x1c1   :  { %v2547_v38 = vmax.f32 %v2545_v57, %v2546_v33  ;;  %v2497_v11 = vadd.f32 %v2436_v20, %v5580_v5  ;;  %v3927_v27 = vpop.f32.mrb[102].mxu1 }
 0x1c2   :  { %v2569_v19 = vrot.slane %v2568_v50, 2  ;;  %v2506_v34 = vadd.f32 %v3927_v27, %v5604_v51  ;;  %v2439_v22 = vpop.f32.mrb[103].mxu1 }
 0x1c3   :  { %v2548_v14 = vrot.slane %v2547_v38, 2  ;;  %v2500_v56 = vadd.f32 %v2439_v22, %v5586_v61 }
 0x1c4   :  { %v2570_v35 = vmax.f32 %v2568_v50, %v2569_v19  ;;  %v2608_v0 = vmax.f32 %v2503_v24, %v2506_v34  ;;  %v4341_v24 = vld [vmem:[%s5831_s6 + $0x10] sm:$0xff]  }
 0x1c5   :  { %v2549_v2 = vmax.f32 %v2547_v38, %v2548_v14  ;;  %v2587_v9 = vmax.f32 %v2497_v11, %v2500_v56 }
 0x1c6   :  { %v2571_v5 = vrot.slane %v2570_v35, 1  ;;  %v2609_v29 = vrot.slane %v2608_v0, 4 }
 0x1c7   :  { %v2550_v7 = vrot.slane %v2549_v2, 1  ;;  %v2588_v51 = vrot.slane %v2587_v9, 4  ;;  %v3930_v41 = vpop.f32.mrb[104].mxu1 }
 0x1c8   :  { %v2572_v12 = vmax.f32 %v2570_v35, %v2571_v5  ;;  %v2610_v21 = vmax.f32 %v2608_v0, %v2609_v29  ;;  %v2515_v61 = vadd.f32 %v3930_v41, %v5637_v46  ;;  %v2452_v63 = vpop.f32.mrb[105].mxu1  ;;  %v4339_v46 = vld [vmem:[%s5831_s6] sm:$0xff]   ;;  %v2703_v5 = vsub.s32 0, %v5670_v16 }
 0x1c9   :  { %v2551_v40 = vmax.f32 %v2549_v2, %v2550_v7  ;;  %v2589_v36 = vmax.f32 %v2587_v9, %v2588_v51  ;;  %v2509_v49 = vadd.f32 %v2452_v63, %v5616_v31  ;;  %v3931_v42 = vpop.f32.mrb[106].mxu1  ;;  %3957 = vmatpush3.bf16.msra.mxu0 %v4339_v46 }
 0x1ca   :  { %v2721_v32 = vadd.f32 %v5683_v43, %v2572_v12  ;;  %v2611_v6 = vrot.slane %v2610_v21, 2  ;;  %v2518_v28 = vadd.f32 %v3931_v42, %v5646_v53  ;;  %v2455_v23 = vpop.f32.mrb[107].mxu1  ;;  %v4340_v53 = vld [vmem:[%s5831_s6 + $0x8] sm:$0xff]   ;;  %3958 = vmatprep.subr.bf16.mxu0 %v4376_v44  ;;  %v2707_v12 = vsub.s32 1, %v5670_v16 }
 0x1cb   :  { %v2718_v45 = vadd.f32 %v5683_v43, %v2551_v40  ;;  %v2590_v13 = vrot.slane %v2589_v36, 2  ;;  %v2512_v47 = vadd.f32 %v2455_v23, %v5622_v52  ;;  %v4342_v40 = vld [vmem:[%s5831_s6 + $0x18] sm:$0xff]  }
 0x1cc   :  { %v2745_v8 = vmax.f32 %v2721_v32, 0.0  ;;  %v2612_v54 = vmax.f32 %v2610_v21, %v2611_v6  ;;  %v2650_v15 = vmax.f32 %v2515_v61, %v2518_v28 }
 0x1cd   :  { %v2742_v31 = vmax.f32 %v2718_v45, 0.0  ;;  %v2591_v59 = vmax.f32 %v2589_v36, %v2590_v13  ;;  %v2629_v18 = vmax.f32 %v2509_v49, %v2512_v47  ;;  %3959 = vmatpush3.bf16.msra.mxu0 %v4340_v53  ;;  %v5718_v13 = vrot.slane %v5679_v48, %v2703_v5 }
 0x1ce   :  { %v2769_v60 = vpack.c.bf16 %v2745_v8, %v2745_v8  ;;  %v2613_v10 = vrot.slane %v2612_v54, 1  ;;  %v2651_v4 = vrot.slane %v2650_v15, 4  ;;  %3960 = vmatprep.subr.bf16.mxu0 %v4376_v44 }
 0x1cf   :  { %v2766_v52 = vpack.c.bf16 %v2742_v31, %v2742_v31  ;;  %v2592_v26 = vrot.slane %v2591_v59, 1  ;;  %v2630_v3 = vrot.slane %v2629_v18, 4  ;;  %v3934_v55 = vpop.f32.mrb[108].mxu1 }
 0x1d0   :  { %v2872_v57 = vunpack.c.l.b16 %v2769_v60  ;;  %v2614_v37 = vmax.f32 %v2612_v54, %v2613_v10  ;;  %v2652_v33 = vmax.f32 %v2650_v15, %v2651_v4  ;;  %v2527_v62 = vadd.f32 %v3934_v55, %v5660_v39  ;;  %v2468_v50 = vpop.f32.mrb[109].mxu1 }
 0x1d1   :  { %v2869_v20 = vunpack.c.l.b16 %v2766_v52  ;;  %v2593_v38 = vmax.f32 %v2591_v59, %v2592_v26  ;;  %v2631_v11 = vmax.f32 %v2629_v18, %v2630_v3  ;;  %v2521_v27 = vadd.f32 %v2468_v50, %v5653_v30  ;;  %v3935_v19 = vpop.f32.mrb[110].mxu1  ;;  %3961 = vmatpush3.bf16.msra.mxu0 %v4341_v24 }
 0x1d2   :  { %v2926_v34 = vrot.slane %v2872_v57, 7  ;;  %v2727_v22 = vadd.f32 %v5683_v43, %v2614_v37  ;;  %v2653_v14 = vrot.slane %v2652_v33, 2  ;;  %v2530_v39 = vadd.f32 %v3935_v19, %v5663_v25  ;;  %v2471_v56 = vpop.f32.mrb[111].mxu1  ;;  %3962 = vmatprep.subr.bf16.mxu0 %v4376_v44 }
 0x1d3   :  { %v2724_v0 = vadd.f32 %v5683_v43, %v2593_v38  ;;  %v2632_v2 = vrot.slane %v2631_v11, 2  ;;  %v2524_v9 = vadd.f32 %v2471_v56, %v5657_v17 }
 0x1d4   :  { %v2927_v29 = vsel %vm2892_vm7, %v2926_v34, %v2869_v20  ;;  %v2654_v7 = vmax.f32 %v2652_v33, %v2653_v14  ;;  %v2692_v51 = vmax.f32 %v2527_v62, %v2530_v39  ;;  %v2751_v17 = vmax.f32 %v2727_v22, 0.0 }
 0x1d5   :  { %v2307_v1 = vpop.f32.mrb[0].mxu0  ;;  %v2748_v25 = vmax.f32 %v2724_v0, 0.0  ;;  %v2633_v21 = vmax.f32 %v2631_v11, %v2632_v2  ;;  %v2671_v61 = vmax.f32 %v2521_v27, %v2524_v9  ;;  %3963 = vmatpush3.bf16.msra.mxu0 %v4342_v40  ;;  %v5727_v2 = vrot.slane %v5679_v48, %v2707_v12 }
 0x1d6   :  { %v2309_v35 = vpop.f32.mrb[1].mxu0  ;;  %v2655_v36 = vrot.slane %v2654_v7, 1  ;;  %v2693_v49 = vrot.slane %v2692_v51, 4  ;;  %v2775_v59 = vpack.c.bf16 %v2751_v17, %v2751_v17  ;;  %3964 = vmatprep.subr.bf16.mxu0 %v4376_v44 }
 0x1d7   :  { %v2311_v30 = vpop.f32.mrb[2].mxu0  ;;  %v2772_v32 = vpack.c.bf16 %v2748_v25, %v2748_v25  ;;  %v2634_v6 = vrot.slane %v2633_v21, 1  ;;  %v2672_v28 = vrot.slane %v2671_v61, 4 }
 0x1d8   :  { %v2313_v41 = vpop.f32.mrb[3].mxu0  ;;  %v2531_v63 = vmax.f32 %v2307_v1, %v2311_v30  ;;  %v2656_v16 = vmax.f32 %v2654_v7, %v2655_v36  ;;  %v2694_v45 = vmax.f32 %v2692_v51, %v2693_v49  ;;  %v2878_v30 = vunpack.c.l.b16 %v2775_v59 }
 0x1d9   :  { %v2538_v42 = vmax.f32 %v2309_v35, %v2313_v41  ;;  %v2875_v46 = vunpack.c.l.b16 %v2772_v32  ;;  %v2635_v8 = vmax.f32 %v2633_v21, %v2634_v6  ;;  %v2673_v54 = vmax.f32 %v2671_v61, %v2672_v28 }
 0x1da   :  { %v2532_v23 = vrot.slane %v2531_v63, 4  ;;  %v2733_v18 = vadd.f32 %v5683_v43, %v2656_v16  ;;  %v2695_v53 = vrot.slane %v2694_v45, 2 }
 0x1db   :  { %v2539_v47 = vrot.slane %v2538_v42, 4  ;;  %v2928_v4 = vrot.slane %v2875_v46, 6  ;;  %v2730_v52 = vadd.f32 %v5683_v43, %v2635_v8  ;;  %v2674_v26 = vrot.slane %v2673_v54, 2 }
 0x1dc   :  { %v2533_v15 = vmax.f32 %v2531_v63, %v2532_v23  ;;  %v2757_v57 = vmax.f32 %v2733_v18, 0.0  ;;  %v2696_v37 = vmax.f32 %v2694_v45, %v2695_v53  ;;  %v2930_v46 = vrot.slane %v2878_v30, 5 }
 0x1dd   :  { %v2317_v31 = vpop.f32.mrb[4].mxu0  ;;  %v2540_v60 = vmax.f32 %v2538_v42, %v2539_v47  ;;  %v5724_v24 = vsel %vm2895_vm8, %v2928_v4, %v2927_v29  ;;  %v2754_v20 = vmax.f32 %v2730_v52, 0.0  ;;  %v2675_v38 = vmax.f32 %v2673_v54, %v2674_v26 }
 0x1de   :  { %v2319_v10 = vpop.f32.mrb[5].mxu0  ;;  %v2534_v3 = vrot.slane %v2533_v15, 2  ;;  %v2781_v27 = vpack.c.bf16 %v2757_v57, %v2757_v57  ;;  %v2697_v19 = vrot.slane %v2696_v37, 1 }
 0x1df   :  { %v2321_v55 = vpop.f32.mrb[6].mxu0  ;;  %v2541_v33 = vrot.slane %v2540_v60, 2  ;;  %v2778_v22 = vpack.c.bf16 %v2754_v20, %v2754_v20  ;;  %v2676_v14 = vrot.slane %v2675_v38, 1  ;;  %v2931_v20 = vsel %vm2898_vm9, %v2930_v46, %v5724_v24 }
 0x1e0   :  { %v2552_v62 = vmax.f32 %v2317_v31, %v2321_v55  ;;  %v2323_v50 = vpop.f32.mrb[7].mxu0  ;;  %v2535_v11 = vmax.f32 %v2533_v15, %v2534_v3  ;;  %v2698_v35 = vmax.f32 %v2696_v37, %v2697_v19  ;;  %v2884_v41 = vunpack.c.l.b16 %v2781_v27 }
 0x1e1   :  { %v2542_v1 = vmax.f32 %v2540_v60, %v2541_v33  ;;  %v2559_v56 = vmax.f32 %v2319_v10, %v2323_v50  ;;  %v2677_v5 = vmax.f32 %v2675_v38, %v2676_v14  ;;  %v2881_v40 = vunpack.c.l.b16 %v2778_v22 }
 0x1e2   :  { %v2553_v34 = vrot.slane %v2552_v62, 4  ;;  %v2536_v39 = vrot.slane %v2535_v11, 1  ;;  %v2739_v25 = vadd.f32 %v5683_v43, %v2698_v35  ;;  %v2934_v53 = vrot.slane %v2884_v41, 3 }
 0x1e3   :  { %v2543_v0 = vrot.slane %v2542_v1, 1  ;;  %v2560_v7 = vrot.slane %v2559_v56, 4  ;;  %v2736_v17 = vadd.f32 %v5683_v43, %v2677_v5  ;;  %v2932_v43 = vrot.slane %v2881_v40, 4 }
 0x1e4   :  { %v2554_v9 = vmax.f32 %v2552_v62, %v2553_v34  ;;  %v2537_v29 = vmax.f32 %v2535_v11, %v2536_v39  ;;  %v2763_v49 = vmax.f32 %v2739_v25, 0.0 }
 0x1e5   :  { %v2327_v51 = vpop.f32.mrb[8].mxu0  ;;  %v2544_v21 = vmax.f32 %v2542_v1, %v2543_v0  ;;  %v2561_v12 = vmax.f32 %v2559_v56, %v2560_v7  ;;  %v2760_v23 = vmax.f32 %v2736_v17, 0.0  ;;  %v2933_v1 = vsel %vm2023_vm4, %v2932_v43, %v2931_v20 }
 0x1e6   :  { %v2555_v61 = vrot.slane %v2554_v9, 2  ;;  %v2329_v63 = vpop.f32.mrb[9].mxu0  ;;  %v2716_v48 = vadd.f32 %v5718_v13, %v2537_v29  ;;  %v2787_v8 = vpack.c.bf16 %v2763_v49, %v2763_v49  ;;  %v2935_v56 = vsel %vm2904_vm10, %v2934_v53, %v2933_v1 }
 0x1e7   :  { %v2331_v36 = vpop.f32.mrb[10].mxu0  ;;  %v2717_v42 = vadd.f32 %v5727_v2, %v2544_v21  ;;  %v2562_v45 = vrot.slane %v2561_v12, 2  ;;  %v2784_v31 = vpack.c.bf16 %v2760_v23, %v2760_v23 }
 0x1e8   :  { %v2556_v32 = vmax.f32 %v2554_v9, %v2555_v61  ;;  %v2573_v6 = vmax.f32 %v2327_v51, %v2331_v36  ;;  %v2333_v28 = vpop.f32.mrb[11].mxu0  ;;  %v2740_v16 = vmax.f32 %v2716_v48, 0.0  ;;  %v2890_v37 = vunpack.c.l.b16 %v2787_v8 }
 0x1e9   :  { %v2580_v47 = vmax.f32 %v2329_v63, %v2333_v28  ;;  %v2563_v59 = vmax.f32 %v2561_v12, %v2562_v45  ;;  %v2741_v60 = vmax.f32 %v2717_v42, 0.0  ;;  %v2887_v52 = vunpack.c.l.b16 %v2784_v31 }
 0x1ea   :  { %v2557_v54 = vrot.slane %v2556_v32, 1  ;;  %v2574_v15 = vrot.slane %v2573_v6, 4  ;;  %v2764_v26 = vpack.c.bf16 %v2740_v16, %v2740_v16  ;;  %v2938_v7 = vrot.slane %v2890_v37, 1 }
 0x1eb   :  { %v2581_v18 = vrot.slane %v2580_v47, 4  ;;  %v2564_v3 = vrot.slane %v2563_v59, 1  ;;  %v2936_v38 = vrot.slane %v2887_v52, 2  ;;  %v2765_v51 = vpack.c.bf16 %v2741_v60, %v2741_v60 }
 0x1ec   :  { %v2558_v10 = vmax.f32 %v2556_v32, %v2557_v54  ;;  %v2575_v4 = vmax.f32 %v2573_v6, %v2574_v15  ;;  %v2867_v42 = vunpack.c.l.b16 %v2764_v26 }
 0x1ed   :  { %v2582_v55 = vmax.f32 %v2580_v47, %v2581_v18  ;;  %v2337_v57 = vpop.f32.mrb[12].mxu0  ;;  %v2565_v11 = vmax.f32 %v2563_v59, %v2564_v3  ;;  %v2937_v30 = vsel %vm2907_vm11, %v2936_v38, %v2935_v56  ;;  %v2868_v16 = vunpack.c.l.b16 %v2765_v51 }
 0x1ee   :  { %v2719_v33 = vadd.f32 %v5718_v13, %v2558_v10  ;;  %v2576_v62 = vrot.slane %v2575_v4, 2  ;;  %v2339_v50 = vpop.f32.mrb[13].mxu0  ;;  %v5741_v17 = vsel %vm2910_vm12, %v2938_v7, %v2937_v30 }
 0x1ef   :  { %v2583_v27 = vrot.slane %v2582_v55, 2  ;;  %v2341_v19 = vpop.f32.mrb[14].mxu0  ;;  %v2720_v35 = vadd.f32 %v5727_v2, %v2565_v11 }
 0x1f0   :  { %v2743_v34 = vmax.f32 %v2719_v33, 0.0  ;;  %v2577_v22 = vmax.f32 %v2575_v4, %v2576_v62  ;;  %v2594_v14 = vmax.f32 %v2337_v57, %v2341_v19  ;;  %v2343_v39 = vpop.f32.mrb[15].mxu0 }
 0x1f1   :  { %v2584_v0 = vmax.f32 %v2582_v55, %v2583_v27  ;;  %v2601_v9 = vmax.f32 %v2339_v50, %v2343_v39  ;;  %v2744_v41 = vmax.f32 %v2720_v35, 0.0 }
 0x1f2   :  { %v2767_v5 = vpack.c.bf16 %v2743_v34, %v2743_v34  ;;  %v2578_v24 = vrot.slane %v2577_v22, 1  ;;  %v2595_v29 = vrot.slane %v2594_v14, 4 }
 0x1f3   :  { %v2585_v25 = vrot.slane %v2584_v0, 1  ;;  %v2602_v21 = vrot.slane %v2601_v9, 4  ;;  %v2768_v48 = vpack.c.bf16 %v2744_v41, %v2744_v41 }
 0x1f4   :  { %v2870_v61 = vunpack.c.l.b16 %v2767_v5  ;;  %v2579_v63 = vmax.f32 %v2577_v22, %v2578_v24  ;;  %v2596_v40 = vmax.f32 %v2594_v14, %v2595_v29 }
 0x1f5   :  { %v2586_v12 = vmax.f32 %v2584_v0, %v2585_v25  ;;  %v2603_v36 = vmax.f32 %v2601_v9, %v2602_v21  ;;  %v2347_v49 = vpop.f32.mrb[16].mxu0  ;;  %v2871_v45 = vunpack.c.l.b16 %v2768_v48 }
 0x1f6   :  { %v2891_v32 = vrot.slane %v2870_v61, 7  ;;  %v2722_v6 = vadd.f32 %v5718_v13, %v2579_v63  ;;  %v2597_v28 = vrot.slane %v2596_v40, 2  ;;  %v2349_v23 = vpop.f32.mrb[17].mxu0 }
 0x1f7   :  { %v2723_v47 = vadd.f32 %v5727_v2, %v2586_v12  ;;  %v2604_v46 = vrot.slane %v2603_v36, 2  ;;  %v2351_v8 = vpop.f32.mrb[18].mxu0  ;;  %v2912_v18 = vrot.slane %v2871_v45, 7 }
 0x1f8   :  { %v2893_v54 = vsel %vm2892_vm7, %v2891_v32, %v2867_v42  ;;  %v2746_v15 = vmax.f32 %v2722_v6, 0.0  ;;  %v2598_v43 = vmax.f32 %v2596_v40, %v2597_v28  ;;  %v2615_v31 = vmax.f32 %v2347_v49, %v2351_v8  ;;  %v2353_v59 = vpop.f32.mrb[19].mxu0 }
 0x1f9   :  { %v2747_v53 = vmax.f32 %v2723_v47, 0.0  ;;  %v2605_v60 = vmax.f32 %v2603_v36, %v2604_v46  ;;  %v2622_v10 = vmax.f32 %v2349_v23, %v2353_v59  ;;  %v2913_v3 = vsel %vm2892_vm7, %v2912_v18, %v2868_v16 }
 0x1fa   :  { %v2770_v4 = vpack.c.bf16 %v2746_v15, %v2746_v15  ;;  %v2599_v52 = vrot.slane %v2598_v43, 1  ;;  %v2616_v26 = vrot.slane %v2615_v31, 4 }
 0x1fb   :  { %v2771_v55 = vpack.c.bf16 %v2747_v53, %v2747_v53  ;;  %v2606_v57 = vrot.slane %v2605_v60, 1  ;;  %v2623_v37 = vrot.slane %v2622_v10, 4 }
 0x1fc   :  { %v2873_v33 = vunpack.c.l.b16 %v2770_v4  ;;  %v2600_v62 = vmax.f32 %v2598_v43, %v2599_v52  ;;  %v2617_v50 = vmax.f32 %v2615_v31, %v2616_v26 }
 0x1fd   :  { %v2874_v20 = vunpack.c.l.b16 %v2771_v55  ;;  %v2607_v38 = vmax.f32 %v2605_v60, %v2606_v57  ;;  %v2624_v11 = vmax.f32 %v2622_v10, %v2623_v37  ;;  %v2357_v27 = vpop.f32.mrb[20].mxu0 }
 0x1fe   :  { %v2894_v19 = vrot.slane %v2873_v33, 6  ;;  %v2725_v1 = vadd.f32 %v5718_v13, %v2600_v62  ;;  %v2618_v34 = vrot.slane %v2617_v50, 2  ;;  %v2359_v22 = vpop.f32.mrb[21].mxu0 }
 0x1ff   :  { %v2914_v14 = vrot.slane %v2874_v20, 6  ;;  %v2726_v39 = vadd.f32 %v5727_v2, %v2607_v38  ;;  %v2625_v56 = vrot.slane %v2624_v11, 2  ;;  %v2361_v35 = vpop.f32.mrb[22].mxu0 }
 0x200   :  { %v2896_v0 = vsel %vm2895_vm8, %v2894_v19, %v2893_v54  ;;  %v2749_v9 = vmax.f32 %v2725_v1, 0.0  ;;  %v2619_v30 = vmax.f32 %v2617_v50, %v2618_v34  ;;  %v2636_v5 = vmax.f32 %v2357_v27, %v2361_v35  ;;  %v2363_v24 = vpop.f32.mrb[23].mxu0 }
 0x201   :  { %v2915_v29 = vsel %vm2895_vm8, %v2914_v14, %v2913_v3  ;;  %v2750_v7 = vmax.f32 %v2726_v39, 0.0  ;;  %v2626_v51 = vmax.f32 %v2624_v11, %v2625_v56  ;;  %v2643_v41 = vmax.f32 %v2359_v22, %v2363_v24 }
 0x202   :  { %v2773_v25 = vpack.c.bf16 %v2749_v9, %v2749_v9  ;;  %v2620_v21 = vrot.slane %v2619_v30, 1  ;;  %v2637_v61 = vrot.slane %v2636_v5, 4 }
 0x203   :  { %v2774_v63 = vpack.c.bf16 %v2750_v7, %v2750_v7  ;;  %v2627_v40 = vrot.slane %v2626_v51, 1  ;;  %v2644_v48 = vrot.slane %v2643_v41, 4 }
 0x204   :  { %v2876_v12 = vunpack.c.l.b16 %v2773_v25  ;;  %v2621_v36 = vmax.f32 %v2619_v30, %v2620_v21  ;;  %v2638_v49 = vmax.f32 %v2636_v5, %v2637_v61 }
 0x205   :  { %v2877_v42 = vunpack.c.l.b16 %v2774_v63  ;;  %v2628_v32 = vmax.f32 %v2626_v51, %v2627_v40  ;;  %v2645_v6 = vmax.f32 %v2643_v41, %v2644_v48  ;;  %v2367_v28 = vpop.f32.mrb[24].mxu0 }
 0x206   :  { %v2897_v23 = vrot.slane %v2876_v12, 5  ;;  %v2728_v16 = vadd.f32 %v5718_v13, %v2621_v36  ;;  %v2639_v45 = vrot.slane %v2638_v49, 2  ;;  %v2369_v47 = vpop.f32.mrb[25].mxu0 }
 0x207   :  { %v2916_v46 = vrot.slane %v2877_v42, 5  ;;  %v2729_v8 = vadd.f32 %v5727_v2, %v2628_v32  ;;  %v2646_v54 = vrot.slane %v2645_v6, 2  ;;  %v2371_v15 = vpop.f32.mrb[26].mxu0 }
 0x208   :  { %v2899_v43 = vsel %vm2898_vm9, %v2897_v23, %v2896_v0  ;;  %v2752_v31 = vmax.f32 %v2728_v16, 0.0  ;;  %v2640_v59 = vmax.f32 %v2638_v49, %v2639_v45  ;;  %v2657_v18 = vmax.f32 %v2367_v28, %v2371_v15  ;;  %v2373_v53 = vpop.f32.mrb[27].mxu0 }
 0x209   :  { %v2753_v60 = vmax.f32 %v2729_v8, 0.0  ;;  %v2647_v10 = vmax.f32 %v2645_v6, %v2646_v54  ;;  %v2664_v4 = vmax.f32 %v2369_v47, %v2373_v53  ;;  %v2917_v52 = vsel %vm2898_vm9, %v2916_v46, %v2915_v29 }
 0x20a   :  { %v2776_v26 = vpack.c.bf16 %v2752_v31, %v2752_v31  ;;  %v2641_v3 = vrot.slane %v2640_v59, 1  ;;  %v2658_v55 = vrot.slane %v2657_v18, 4 }
 0x20b   :  { %v2777_v57 = vpack.c.bf16 %v2753_v60, %v2753_v60  ;;  %v2648_v37 = vrot.slane %v2647_v10, 1  ;;  %v2665_v33 = vrot.slane %v2664_v4, 4 }
 0x20c   :  { %v2879_v62 = vunpack.c.l.b16 %v2776_v26  ;;  %v2642_v50 = vmax.f32 %v2640_v59, %v2641_v3  ;;  %v2659_v20 = vmax.f32 %v2657_v18, %v2658_v55 }
 0x20d   :  { %v2880_v38 = vunpack.c.l.b16 %v2777_v57  ;;  %v2649_v11 = vmax.f32 %v2647_v10, %v2648_v37  ;;  %v2666_v27 = vmax.f32 %v2664_v4, %v2665_v33  ;;  %v2377_v19 = vpop.f32.mrb[28].mxu0 }
 0x20e   :  { %v2900_v1 = vrot.slane %v2879_v62, 4  ;;  %v2731_v34 = vadd.f32 %v5718_v13, %v2642_v50  ;;  %v2660_v22 = vrot.slane %v2659_v20, 2  ;;  %v2379_v14 = vpop.f32.mrb[29].mxu0 }
 0x20f   :  { %v2918_v39 = vrot.slane %v2880_v38, 4  ;;  %v2732_v56 = vadd.f32 %v5727_v2, %v2649_v11  ;;  %v2667_v35 = vrot.slane %v2666_v27, 2  ;;  %v2381_v0 = vpop.f32.mrb[30].mxu0 }
 0x210   :  { %v2902_v9 = vsel %vm2023_vm4, %v2900_v1, %v2899_v43  ;;  %v2755_v30 = vmax.f32 %v2731_v34, 0.0  ;;  %v2661_v5 = vmax.f32 %v2659_v20, %v2660_v22  ;;  %v2678_v24 = vmax.f32 %v2377_v19, %v2381_v0  ;;  %v2383_v29 = vpop.f32.mrb[31].mxu0  ;;  %v4332_v0 = vld [vmem:[%s5829_s4 + $0x88] sm:$0xff]  }
 0x211   :  { %v2756_v7 = vmax.f32 %v2732_v56, 0.0  ;;  %v2668_v51 = vmax.f32 %v2666_v27, %v2667_v35  ;;  %v2685_v41 = vmax.f32 %v2379_v14, %v2383_v29  ;;  %v2919_v25 = vsel %vm2023_vm4, %v2918_v39, %v2917_v52  ;;  %v4337_v29 = vld [vmem:[%s5829_s4 + $0xb0] sm:$0xff]  }
 0x212   :  { %v2779_v21 = vpack.c.bf16 %v2755_v30, %v2755_v30  ;;  %v2662_v61 = vrot.slane %v2661_v5, 1  ;;  %v2679_v63 = vrot.slane %v2678_v24, 4  ;;  %v4334_v30 = vld [vmem:[%s5829_s4 + $0x98] sm:$0xff]  }
 0x213   :  { %v2780_v40 = vpack.c.bf16 %v2756_v7, %v2756_v7  ;;  %v2669_v48 = vrot.slane %v2668_v51, 1  ;;  %v2686_v12 = vrot.slane %v2685_v41, 4  ;;  %v4338_v7 = vld [vmem:[%s5829_s4 + $0xb8] sm:$0xff]  }
 0x214   :  { %v2882_v36 = vunpack.c.l.b16 %v2779_v21  ;;  %v2663_v49 = vmax.f32 %v2661_v5, %v2662_v61  ;;  %v2680_v42 = vmax.f32 %v2678_v24, %v2679_v63  ;;  %v4335_v5 = vld [vmem:[%s5829_s4 + $0xa0] sm:$0xff]   ;;  %v4336_v24 = vld [vmem:[%s5829_s4 + $0xa8] sm:$0xff]   ;;  %v4345_v21 = vld [vmem:[%s5831_s6 + $0x30] sm:$0xff]  }
 0x215   :  { %v2883_v32 = vunpack.c.l.b16 %v2780_v40  ;;  %v2670_v6 = vmax.f32 %v2668_v51, %v2669_v48  ;;  %v2687_v28 = vmax.f32 %v2685_v41, %v2686_v12  ;;  %v2942_v51 = vpack.c.b16 %v5741_v17, %v5741_v17  ;;  %v4343_v41 = vld [vmem:[%s5831_s6 + $0x20] sm:$0xff]   ;;  %v4346_v17 = vld [vmem:[%s5831_s6 + $0x38] sm:$0xff]  }
 0x216   :  { %v2903_v23 = vrot.slane %v2882_v36, 3  ;;  %v2734_v16 = vadd.f32 %v5718_v13, %v2663_v49  ;;  %v2681_v45 = vrot.slane %v2680_v42, 2  ;;  %3965 = vmatpush3.bf16.msra.mxu0 %v4343_v41  ;;  %v3623_v36 = vld [vmem:[%s5832_s5] ss:$0 sm:$0xff] }
 0x217   :  { %v2920_v47 = vrot.slane %v2883_v32, 3  ;;  %v2735_v46 = vadd.f32 %v5727_v2, %v2670_v6  ;;  %v2688_v8 = vrot.slane %v2687_v28, 2  ;;  %3966 = vmatprep.subr.bf16.mxu0 %v4376_v44 }
 0x218   :  { %v2758_v54 = vmax.f32 %v2734_v16, 0.0  ;;  %v2682_v15 = vmax.f32 %v2680_v42, %v2681_v45  ;;  %v2905_v43 = vsel %vm2904_vm10, %v2903_v23, %v2902_v9  ;;  %v4333_v9 = vld [vmem:[%s5829_s4 + $0x90] sm:$0xff]   ;;  %v3277_v45 = vand.u32 127, %v2701_v58 }
 0x219   :  { %v2759_v31 = vmax.f32 %v2735_v46, 0.0  ;;  %v2689_v59 = vmax.f32 %v2687_v28, %v2688_v8  ;;  %v2921_v18 = vsel %vm2904_vm10, %v2920_v47, %v2919_v25  ;;  %v4344_v25 = vld [vmem:[%s5831_s6 + $0x28] sm:$0xff]  }
 0x21a   :  { %v2782_v53 = vpack.c.bf16 %v2758_v54, %v2758_v54  ;;  %v2683_v60 = vrot.slane %v2682_v15, 1  ;;  %3967 = vmatpush3.bf16.msra.mxu0 %v4344_v25  ;;  %vm3278_vm13 = vcmp.lt.s32.totalorder %v3277_v45, 2 }
 0x21b   :  { %v2783_v10 = vpack.c.bf16 %v2759_v31, %v2759_v31  ;;  %v2690_v4 = vrot.slane %v2689_v59, 1  ;;  %3968 = vmatprep.subr.bf16.mxu0 %v4376_v44 }
 0x21c   :  { %v2885_v52 = vunpack.c.l.b16 %v2782_v53  ;;  %v2684_v26 = vmax.f32 %v2682_v15, %v2683_v60 }
 0x21d   :  { %v2886_v3 = vunpack.c.l.b16 %v2783_v10  ;;  %v2691_v55 = vmax.f32 %v2689_v59, %v2690_v4 }
 0x21e   :  { %v2906_v57 = vrot.slane %v2885_v52, 2  ;;  %v2737_v37 = vadd.f32 %v5718_v13, %v2684_v26  ;;  %3969 = vmatpush3.bf16.msra.mxu0 %v4345_v21 }
 0x21f   :  { %v2922_v33 = vrot.slane %v2886_v3, 2  ;;  %v2738_v62 = vadd.f32 %v5727_v2, %v2691_v55  ;;  %v4331_v2 = vld [vmem:[%s5829_s4 + $0x80] sm:$0xff]   ;;  %3970 = vmatprep.subr.bf16.mxu0 %v4376_v44 }
 0x220   :  { %v2761_v50 = vmax.f32 %v2737_v37, 0.0  ;;  %v2908_v20 = vsel %vm2907_vm11, %v2906_v57, %v2905_v43 }
 0x221   :  { %v2762_v38 = vmax.f32 %v2738_v62, 0.0  ;;  %v2923_v11 = vsel %vm2907_vm11, %v2922_v33, %v2921_v18 }
 0x222   :  { %v2785_v27 = vpack.c.bf16 %v2761_v50, %v2761_v50  ;;  %3971 = vmatpush3.bf16.msra.mxu0 %v4346_v17 }
 0x223   :  { %v2786_v19 = vpack.c.bf16 %v2762_v38, %v2762_v38 }
 0x224   :  { %v2888_v1 = vunpack.c.l.b16 %v2785_v27 }
 0x225   :  { %v2889_v34 = vunpack.c.l.b16 %v2786_v19 }
 0x226   :  { %v2909_v22 = vrot.slane %v2888_v1, 1 }
 0x227   :  { %v2924_v14 = vrot.slane %v2889_v34, 1 }
 0x228   :  { %v2911_v39 = vsel %vm2910_vm12, %v2909_v22, %v2908_v20 }
 0x229   :  { %v2925_v56 = vsel %vm2910_vm12, %v2924_v14, %v2923_v11  ;;  %v2940_v35 = vpack.c.b16 %v2911_v39, %v2911_v39 }
 0x22a   :  { %v2941_v13 = vpack.c.b16 %v2925_v56, %v2925_v56 }
 0x22c   :  { %3122 = vmatprep.mubr.bf16.mxu1 %v2941_v13 }
 0x22d   :  { %3123 = vmatmul.mubr.bf16.vlgmr.msra.gmra.mrb[112].mxu1 %v2940_v35 }
 0x22e   :  { %3937 = vmatpush3.bf16.msra.mxu1 %v4331_v2  ;;  %3952 = vmatprep.mubr.msk.bf16.mxu1 %vm4377_vm6, %v4376_v44 }
 0x22f   :  { %3938 = vmatprep.subr.bf16.mxu1 %v4376_v44 }
 0x232   :  { %3939 = vmatpush3.bf16.msra.mxu1 %v4332_v0 }
 0x233   :  { %3940 = vmatprep.subr.bf16.mxu1 %v4376_v44 }
 0x236   :  { %3941 = vmatpush3.bf16.msra.mxu1 %v4333_v9 }
 0x237   :  { %3942 = vmatprep.subr.bf16.mxu1 %v4376_v44 }
 0x23a   :  { %3943 = vmatpush3.bf16.msra.mxu1 %v4334_v30 }
 0x23b   :  { %3944 = vmatprep.subr.bf16.mxu1 %v4376_v44 }
 0x23e   :  { %3945 = vmatpush3.bf16.msra.mxu1 %v4335_v5 }
 0x23f   :  { %3946 = vmatprep.subr.bf16.mxu1 %v4376_v44 }
 0x242   :  { %3947 = vmatpush3.bf16.msra.mxu1 %v4336_v24 }
 0x243   :  { %3948 = vmatprep.subr.bf16.mxu1 %v4376_v44 }
 0x246   :  { %3949 = vmatpush3.bf16.msra.mxu1 %v4337_v29 }
 0x247   :  { %3950 = vmatprep.subr.bf16.mxu1 %v4376_v44 }
 0x24a   :  { %3951 = vmatpush3.bf16.msra.mxu1 %v4338_v7 }
 0x24d   :  { %3953 = vmatmul.mubr.bf16.vlgmr.msra.gmra.mrb[116].mxu1 %v2942_v51 }
 0x300   :  { %v3880_v61 = vpop.f32.mrb[112].mxu1 }
 0x301   :  { %v3881_v63 = vpop.f32.mrb[113].mxu1 }
 0x302   :  { %v3882_v40 = vadd.f32 %v3881_v63, %v3880_v61  ;;  %v3883_v48 = vpop.f32.mrb[114].mxu1 }
 0x303   :  { %v3884_v12 = vpop.f32.mrb[115].mxu1 }
 0x304   :  { %v3125_v49 = vadd.f32 %v3882_v40, %v3623_v36 }
 0x320   :  { %v3164_v42 = vpop.f32.mrb[116].mxu1 }
 0x321   :  { %v3165_v32 = vadd.f32 %v3164_v42, %v3125_v49  ;;  %v3954_v6 = vpop.f32.mrb[117].mxu1 }
 0x322   :  { %v3167_v28 = vpop.f32.mrb[118].mxu1 }
 0x323   :  { %v3170_v44 = vmax.f32 %v3165_v32, 0.0  ;;  %v3955_v23 = vpop.f32.mrb[119].mxu1 }
 0x325   :  { %v3171_v16 = vpack.c.bf16 %v3170_v44, %v3170_v44 }
 0x327   :  { %3973 = vmatmul.mubr.bf16.vlgmr.msra.gmra.mrb[32].mxu0 %v3171_v16 }
 0x3fa   :  { %v3270_v47 = vpop.f32.mrb[32].mxu0 }
 0x3fb   :  { %v3974_v46 = vpop.f32.mrb[33].mxu0  ;;  %v3279_v8 = vsel %vm3278_vm13, %v3270_v47, -1e+30 }
 0x3fc   :  { %3280 = vmax.xlane.f32.xlu0 %v3279_v8  ;;  %v3273_v54 = vpop.f32.mrb[34].mxu0 }
 0x3fd   :  { %v3975_v15 = vpop.f32.mrb[35].mxu0 }
 0x489   :  { %v3281_v43 = vpop.xlane.xlu0 %3280 }
 0x48a   :  { %v3282_v31 = vsub.f32 %v3279_v8, %v3281_v43 }
 0x48c   :  { %v3283_v59 = vmul.f32 1.442695, %v3282_v31 }
 0x48e   :  { %4347 = vpow2.f32 %v3283_v59 }
 0x498   :  { %v4348_v18 = vpop.eup %4347 }
 0x499   :  { %3285 = vadd.xlane.f32.xlu0 %v4348_v18 }
 0x526   :  { %v3286_v53 = vpop.xlane.xlu0 %3285 }
 0x527   :  { %4349 = vlog2.f32 %v3286_v53 }
 0x531   :  { %v4350_v60 = vpop.eup %4349 }
 0x532   :  { %v3288_v10 = vmul.f32 0.6931472, %v4350_v60 }
 0x534   :  { %v3289_v4 = vsub.f32 %v3282_v31, %v3288_v10 }
 0x536   :  { %3290 = vst [vmem:[%s5833_s7] sm:$0xff] %v3289_v4 }

</bundles_post_ra>
